<compile_context>
chip_gen: v7x
topology: tpu7x:2x2x1
jax: 0.10.0
libtpu: 0.0.40
codegen_flags: <defaults>
</compile_context>

<pallas_src>
import jax
import jax.numpy as jnp
from jax.experimental import pallas as pl
from jax.experimental.pallas import tpu as pltpu

PART = 4        # self.part
FEAT = 2048     # ResNet50 layer4 channels / ClassBlock input_dim
BOT = 256       # num_bottleneck
BN_EPS = 1e-5   # nn.BatchNorm1d default eps
LANE = 128


def _pcb_head_kernel(x_ref, w1_ref, shift_ref, w2_ref, b2_ref, o_ref):
    # x_ref:     (TB, Hp, W, C)   bf16  one part's spatial slab for a batch tile
    # w1_ref:    (1, C, BOT)      bf16  Linear(2048,256) weight with BN scale
    #                                   and 1/(Hp*W) folded in column-wise
    # shift_ref: (1, 1, BOT)      f32   b1*scale + (beta - running_mean*scale)
    # w2_ref:    (1, BOT, NCLSP)  f32   classifier weight (lane-padded)
    # b2_ref:    (1, 1, NCLSP)    f32
    # o_ref:     (1, TB, NCLSP)   f32
    x = x_ref[...].astype(jnp.float32)               # (TB, Hp, W, C)
    # AdaptiveAvgPool2d((4,1)) region: pure sum-pool; the 1/N is folded into w1.
    pooled = x.sum(axis=1).sum(axis=1)               # (TB, C) f32 accumulation
    # TODO(synk): Dropout(p=0.5) after avgpool and inside ClassBlock is identity
    # in inference mode.
    h = jnp.dot(pooled.astype(jnp.bfloat16), w1_ref[0],
                preferred_element_type=jnp.float32) + shift_ref[0]   # Linear + BN(eval)
    y = jnp.dot(h, w2_ref[0],
                preferred_element_type=jnp.float32) + b2_ref[0]      # Linear(256, class)
    o_ref[0] = y.astype(o_ref.dtype)


def _round_up(v, m):
    return ((v + m - 1) // m) * m


def _choose_batch_tile(batch, hp, w, c):
    """Batch tile sized so the bf16 x-tile is ~4 MiB (fits v7x/v5e scoped VMEM
    with double buffering); multiple of 8 sublanes when it tiles the batch."""
    bytes_per_row = hp * w * c * 2          # bf16
    tb = max(8, (4 << 20) // max(bytes_per_row, 1))
    tb = max(8, (tb // 8) * 8)
    tb = min(tb, 256)
    if batch <= tb:
        return batch                        # single tile == full batch dim
    return tb


def pcb_forward(feats_nhwc, params):
    """PCB head (eval mode).

    feats_nhwc: (B, H, W, 2048) channels-last layer4 features, H % 4 == 0.
    Returns a list of PART arrays of shape (B, class_num), matching the
    PyTorch forward's `y` list.
    """
    B, H, W, C = feats_nhwc.shape
    assert C == FEAT and H % PART == 0
    Hp = H // PART
    n_spatial = Hp * W
    class_num = params["w2"].shape[-1]
    ncls_pad = _round_up(class_num, LANE)

    # bf16 activations (no-op if the backbone already emits bf16).
    x = feats_nhwc if feats_nhwc.dtype == jnp.bfloat16 else feats_nhwc.astype(jnp.bfloat16)

    tb = _choose_batch_tile(B, Hp, W, C)
    b_pad = _round_up(B, tb)
    if b_pad != B:
        x = jnp.pad(x, ((0, b_pad - B), (0, 0), (0, 0), (0, 0)))

    # Constant folding (param prep, outside the kernel):
    #   scale  = gamma / sqrt(running_var + eps)
    #   w1'    = w1 * scale / (Hp*W)          (column-wise)
    #   shift' = b1 * scale + beta - running_mean * scale
    scale = params["gamma"] / jnp.sqrt(params["running_var"] + BN_EPS)      # (PART, BOT)
    shift = params["beta"] - params["running_mean"] * scale
    w1_k = (params["w1"] * (scale / n_spatial)[:, None, :]).astype(jnp.bfloat16)  # (PART, FEAT, BOT)
    shift_k = (params["b1"] * scale + shift)[:, None, :].astype(jnp.float32)      # (PART, 1, BOT)
    # Lane-pad the classifier to a multiple of 128 (dense vst, clean MXU N dim).
    w2_k = jnp.zeros((PART, BOT, ncls_pad), jnp.float32).at[:, :, :class_num].set(params["w2"])
    b2_k = jnp.zeros((PART, 1, ncls_pad), jnp.float32).at[:, 0, :class_num].set(params["b2"])

    grid = (PART, b_pad // tb)
    out = pl.pallas_call(
        _pcb_head_kernel,
        out_shape=jax.ShapeDtypeStruct((PART, b_pad, ncls_pad), jnp.float32),
        grid_spec=pltpu.PrefetchScalarGridSpec(
            num_scalar_prefetch=0,
            grid=grid,
            in_specs=[
                # Part i selected directly from NHWC via the H-axis block index.
                pl.BlockSpec((tb, Hp, W, C), lambda i, b: (b, i, 0, 0)),
                # Weights: constant across the batch-tile axis -> stay resident.
                pl.BlockSpec((1, C, BOT),        lambda i, b: (i, 0, 0)),
                pl.BlockSpec((1, 1, BOT),        lambda i, b: (i, 0, 0)),
                pl.BlockSpec((1, BOT, ncls_pad), lambda i, b: (i, 0, 0)),
                pl.BlockSpec((1, 1, ncls_pad),   lambda i, b: (i, 0, 0)),
            ],
            out_specs=pl.BlockSpec((1, tb, ncls_pad), lambda i, b: (i, b, 0)),
        ),
        compiler_params=pltpu.CompilerParams(
            dimension_semantics=("parallel", "parallel")),
    )(x, w1_k, shift_k, w2_k, b2_k)

    # PyTorch forward returns a list y of `part` predictions.
    return [out[i, :B, :class_num] for i in range(PART)]


def init_params(key, class_num):
    """Deterministic init matching weights_init_kaiming / weights_init_classifier
    (raw, PyTorch-equivalent parameters; eval-mode running stats)."""
    k1, k2, k3 = jax.random.split(key, 3)
    # ClassBlock Linear(2048 -> 256): kaiming_normal_(fan_out) -> std=sqrt(2/256); bias 0.
    w1 = jax.random.normal(k1, (PART, FEAT, BOT), jnp.float32) * jnp.sqrt(2.0 / BOT)
    b1 = jnp.zeros((PART, BOT), jnp.float32)
    # BatchNorm1d(256): weight ~ N(1, 0.02), bias = 0; running mean=0, var=1.
    gamma = 1.0 + 0.02 * jax.random.normal(k2, (PART, BOT), jnp.float32)
    beta = jnp.zeros((PART, BOT), jnp.float32)
    running_mean = jnp.zeros((PART, BOT), jnp.float32)
    running_var = jnp.ones((PART, BOT), jnp.float32)
    # classifier Linear(256 -> class_num): weight ~ N(0, 0.001), bias = 0.
    w2 = 0.001 * jax.random.normal(k3, (PART, BOT, class_num), jnp.float32)
    b2 = jnp.zeros((PART, class_num), jnp.float32)
    return dict(w1=w1, b1=b1, gamma=gamma, beta=beta,
                running_mean=running_mean, running_var=running_var,
                w2=w2, b2=b2)


def reference(feats_nhwc, params):
    """Plain-JAX f32 reference of the PCB head (eval mode)."""
    x = feats_nhwc.astype(jnp.float32)
    B, H, W, C = x.shape
    Hp = H // PART
    pooled = x.reshape(B, PART, Hp, W, C).mean(axis=(2, 3))      # (B, PART, C)
    scale = params["gamma"] / jnp.sqrt(params["running_var"] + BN_EPS)
    shift = params["beta"] - params["running_mean"] * scale
    hi = jax.lax.Precision.HIGHEST
    outs = []
    for i in range(PART):
        f = pooled[:, i, :]                                      # torch.squeeze(x[:, :, i])
        h = jnp.dot(f, params["w1"][i], precision=hi) + params["b1"][i]
        h = h * scale[i] + shift[i]
        y = jnp.dot(h, params["w2"][i], precision=hi) + params["b2"][i]
        outs.append(y)
    return outs


if __name__ == "__main__":
    key = jax.random.PRNGKey(0)
    kx, kp = jax.random.split(key)
    class_num = 16
    B, H, W = 2, 8, 4  # small layer4-sized feature map (H divisible by part=4)
    # Channels-last layer4 features in bf16, as a TPU backbone would emit.
    x = jax.random.normal(kx, (B, H, W, FEAT), jnp.float32).astype(jnp.bfloat16)
    params = init_params(kp, class_num)

    ys = jax.block_until_ready(pcb_forward(x, params))
    refs = reference(x, params)
    for i in range(PART):
        assert ys[i].shape == (B, class_num)
        assert jnp.allclose(ys[i], refs[i], atol=2e-3, rtol=2e-3), f"mismatch in part {i}"
    print("KERNEL_OK")
</pallas_src>

<mosaic_0001>
module attributes {stable_mosaic.version = 11 : i64} {
  func.func @_pcb_head_kernel(%arg0: i32, %arg1: i32, %arg2: memref<2x2x4x2048xbf16, #tpu.memory_space<vmem>>, %arg3: memref<1x2048x256xbf16, #tpu.memory_space<vmem>>, %arg4: memref<1x1x256xf32, #tpu.memory_space<vmem>>, %arg5: memref<1x256x128xf32, #tpu.memory_space<vmem>>, %arg6: memref<1x1x128xf32, #tpu.memory_space<vmem>>, %arg7: memref<1x2x128xf32, #tpu.memory_space<vmem>>) attributes {dimension_semantics = [#tpu.dimension_semantics<parallel>, #tpu.dimension_semantics<parallel>], iteration_bounds = array<i64: 4, 1>, scalar_prefetch = 0 : i64, scratch_operands = 0 : i64, tpu.core_type = #tpu.core_type<tc>, window_params = [{transform_indices = @transform_0, window_bounds = array<i64: 2, 2, 4, 2048>}, {transform_indices = @transform_1, window_bounds = array<i64: 1, 2048, 256>}, {transform_indices = @transform_2, window_bounds = array<i64: 1, 1, 256>}, {transform_indices = @transform_3, window_bounds = array<i64: 1, 256, 128>}, {transform_indices = @transform_4, window_bounds = array<i64: 1, 1, 128>}, {transform_indices = @transform_5, window_bounds = array<i64: 1, 2, 128>}]} {
    %c0 = arith.constant 0 : index
    %c0_0 = arith.constant 0 : index
    %c0_1 = arith.constant 0 : index
    %c0_2 = arith.constant 0 : index
    %0 = vector.load %arg2[%c0, %c0_0, %c0_1, %c0_2] : memref<2x2x4x2048xbf16, #tpu.memory_space<vmem>>, vector<2x2x4x2048xbf16>
    %1 = arith.extf %0 : vector<2x2x4x2048xbf16> to vector<2x2x4x2048xf32>
    %cst = arith.constant dense<0.000000e+00> : vector<2x4x2048xf32>
    %2 = vector.multi_reduction <add>, %1, %cst [1] : vector<2x2x4x2048xf32> to vector<2x4x2048xf32>
    %cst_3 = arith.constant dense<0.000000e+00> : vector<2x2048xf32>
    %3 = vector.multi_reduction <add>, %2, %cst_3 [1] : vector<2x4x2048xf32> to vector<2x2048xf32>
    %4 = arith.truncf %3 : vector<2x2048xf32> to vector<2x2048xbf16>
    %c0_4 = arith.constant 0 : index
    %c0_5 = arith.constant 0 : index
    %c0_6 = arith.constant 0 : index
    %5 = vector.load %arg3[%c0_4, %c0_5, %c0_6] : memref<1x2048x256xbf16, #tpu.memory_space<vmem>>, vector<1x2048x256xbf16>
    %6 = vector.shape_cast %5 : vector<1x2048x256xbf16> to vector<2048x256xbf16>
    %cst_7 = arith.constant dense<0.000000e+00> : vector<2x256xf32>
    %7 = tpu.matmul %4, %6, %cst_7 {dimension_numbers = #tpu.dot_dimension_numbers<[1], [0], [0], [1], [0, 0, 1, 1], [], []>} : vector<2x2048xbf16>, vector<2048x256xbf16>, vector<2x256xf32> -> vector<2x256xf32>
    %c0_8 = arith.constant 0 : index
    %c0_9 = arith.constant 0 : index
    %c0_10 = arith.constant 0 : index
    %8 = vector.load %arg4[%c0_8, %c0_9, %c0_10] : memref<1x1x256xf32, #tpu.memory_space<vmem>>, vector<1x1x256xf32>
    %9 = vector.shape_cast %8 : vector<1x1x256xf32> to vector<1x256xf32>
    %10 = vector.broadcast %9 : vector<1x256xf32> to vector<2x256xf32>
    %11 = arith.addf %7, %10 : vector<2x256xf32>
    %c0_11 = arith.constant 0 : index
    %c0_12 = arith.constant 0 : index
    %c0_13 = arith.constant 0 : index
    %12 = vector.load %arg5[%c0_11, %c0_12, %c0_13] : memref<1x256x128xf32, #tpu.memory_space<vmem>>, vector<1x256x128xf32>
    %13 = vector.shape_cast %12 : vector<1x256x128xf32> to vector<256x128xf32>
    %cst_14 = arith.constant dense<0.000000e+00> : vector<2x128xf32>
    %14 = tpu.matmul %11, %13, %cst_14 {dimension_numbers = #tpu.dot_dimension_numbers<[1], [0], [0], [1], [0, 0, 1, 1], [], []>} : vector<2x256xf32>, vector<256x128xf32>, vector<2x128xf32> -> vector<2x128xf32>
    %c0_15 = arith.constant 0 : index
    %c0_16 = arith.constant 0 : index
    %c0_17 = arith.constant 0 : index
    %15 = vector.load %arg6[%c0_15, %c0_16, %c0_17] : memref<1x1x128xf32, #tpu.memory_space<vmem>>, vector<1x1x128xf32>
    %16 = vector.shape_cast %15 : vector<1x1x128xf32> to vector<1x128xf32>
    %17 = vector.broadcast %16 : vector<1x128xf32> to vector<2x128xf32>
    %18 = arith.addf %14, %17 : vector<2x128xf32>
    %c0_18 = arith.constant 0 : index
    %c0_19 = arith.constant 0 : index
    %c0_20 = arith.constant 0 : index
    %19 = vector.load %arg7[%c0_18, %c0_19, %c0_20] : memref<1x2x128xf32, #tpu.memory_space<vmem>>, vector<1x2x128xf32>
    %20 = vector.shape_cast %19 : vector<1x2x128xf32> to vector<2x128xf32>
    %21 = vector.shape_cast %18 : vector<2x128xf32> to vector<1x2x128xf32>
    tpu.vector_store %arg7[%c0_18, %c0_19, %c0_20], %21 {strides = array<i32>} : memref<1x2x128xf32, #tpu.memory_space<vmem>>, vector<1x2x128xf32>,
    return
  }
  func.func @transform_0(%arg0: i32, %arg1: i32) -> (i32, i32, i32, i32) {
    %c0_i32 = arith.constant 0 : i32
    %c0_i32_0 = arith.constant 0 : i32
    %c0_i32_1 = arith.constant 0 : i32
    return %arg1, %arg0, %c0_i32, %c0_i32_0 : i32, i32, i32, i32
  }
  func.func @transform_1(%arg0: i32, %arg1: i32) -> (i32, i32, i32) {
    %c0_i32 = arith.constant 0 : i32
    %c0_i32_0 = arith.constant 0 : i32
    %c0_i32_1 = arith.constant 0 : i32
    return %arg0, %c0_i32, %c0_i32_0 : i32, i32, i32
  }
  func.func @transform_2(%arg0: i32, %arg1: i32) -> (i32, i32, i32) {
    %c0_i32 = arith.constant 0 : i32
    %c0_i32_0 = arith.constant 0 : i32
    %c0_i32_1 = arith.constant 0 : i32
    return %arg0, %c0_i32, %c0_i32_0 : i32, i32, i32
  }
  func.func @transform_3(%arg0: i32, %arg1: i32) -> (i32, i32, i32) {
    %c0_i32 = arith.constant 0 : i32
    %c0_i32_0 = arith.constant 0 : i32
    %c0_i32_1 = arith.constant 0 : i32
    return %arg0, %c0_i32, %c0_i32_0 : i32, i32, i32
  }
  func.func @transform_4(%arg0: i32, %arg1: i32) -> (i32, i32, i32) {
    %c0_i32 = arith.constant 0 : i32
    %c0_i32_0 = arith.constant 0 : i32
    %c0_i32_1 = arith.constant 0 : i32
    return %arg0, %c0_i32, %c0_i32_0 : i32, i32, i32
  }
  func.func @transform_5(%arg0: i32, %arg1: i32) -> (i32, i32, i32) {
    %c0_i32 = arith.constant 0 : i32
    %c0_i32_0 = arith.constant 0 : i32
    return %arg0, %arg1, %c0_i32 : i32, i32, i32
  }
}

</mosaic_0001>

<bundles_post_ra>
// kernel: tpu_custom_call.1
= control target key start
LH: loop header
LB: loop body
LE: loop exit
PB: predicated region body
PF: predicated region fallthrough
CT: control target
= control target key end

     0   :  { %s5212_s0 = inlined_call_operand.hbm [shape: bf16[2,8,4,2048], index: 0, kind: input, shape index: {}]   ;;  %s5213_s1 = inlined_call_operand.hbm [shape: bf16[4,2048,256], index: 1, kind: input, shape index: {}]   ;;  %s5214_s2 = inlined_call_operand.hbm [shape: f32[4,1,256], index: 2, kind: input, shape index: {}]   ;;  %s5215_s3 = inlined_call_operand.hbm [shape: f32[4,256,128], index: 3, kind: input, shape index: {}]   ;;  %s5216_s4 = inlined_call_operand.hbm [shape: f32[4,1,128], index: 4, kind: input, shape index: {}]   ;;  %s5217_s5 = inlined_call_operand.hbm [shape: f32[4,2,128], index: 5, kind: output, shape index: {}]  }
   0x1   :  { %5223 = sst [smem:[#allocation22_spill]] %s5212_s0 }
   0x2   :  { %5224 = sst [smem:[#allocation23_spill]] %s5213_s1 }
   0x3   :  { %10 = vsyncpa [#allocation3], 0 }
   0x4   :  { %12 = vsyncpa [#allocation3 + $0x1], 0 }
   0x5   :  { %13 = vsyncpa [#allocation6], 0 }
   0x6   :  { %15 = vsyncpa [#allocation6 + $0x1], 0 }
   0x7   :  { %16 = vsyncpa [#allocation9], 0 }
   0x8   :  { %18 = vsyncpa [#allocation9 + $0x1], 0 }
   0x9   :  { %19 = vsyncpa [#allocation4], 0 }
   0xa   :  { %21 = vsyncpa [#allocation4 + $0x1], 0  ;;  %s4310_s18 = smov 0   ;;  %s4312_s19 = smov 0  }
   0xb   :  { %s4314_s20 = smov 0   ;;  %s4316_s21 = smov 0  }
   0xc   :  { %s4318_s22 = smov 0   ;;  %s4320_s23 = smov 0  }
   0xd LB: > { %5225 = sst [smem:[#allocation19_spill]] %s4253_s20  ;;  %s4341_s24 = sadd.s32 4294967295, %s4265_s23   ;;  %s4265_s23 = sphi %s4320_s23, %s27_s23   ;;  %s4261_s22 = sphi %s4318_s22, %s5244_s22   ;;  %s4257_s21 = sphi %s4316_s21, %s5243_s21   ;;  %s4253_s20 = sphi %s4314_s20, %s5239_s20   ;;  %s4249_s19 = sphi %s4312_s19, %s5242_s19   ;;  %s4245_s18 = sphi %s4310_s18, %s5241_s18  }
   0xe   : > { %s3213_s25 = sadd.s32 4294967294, %s4265_s23   ;;  %s39_s26 = sadd.s32 1, %s4261_s22 }
   0xf   : > { %s48_s27 = sadd.s32 1, %s4253_s20  ;;  %p41_p0 = scmp.ge.s32.totalorder %s39_s26, 4 }
  0x10   : > { %p55_p1 = scmp.ne.s32.totalorder %s4253_s20, %s4249_s19  ;;  %p56_p2 = scmp.eq.s32.totalorder %s4265_s23, 0 }
  0x11   : > { %p61_p3 = scmp.ne.s32.totalorder %s4249_s19, %s4245_s18  ;;  %s5246_s26 = smov (%p41_p0, %s39_s26), 0 }
  0x12   : > { %5226 = sst [smem:[#allocation20_spill]] %s5246_s26  ;;  %p4353_p4 = por %p56_p2, %p55_p1 }
  0x13   : > { %p62_p5 = scmp.eq.s32.totalorder %s4341_s24, 0  ;;  %s44_s29 = ssub.s32 %s4261_s22, %s5246_s26 }
  0x14   : > { %p191_p6 = scmp.eq.s32.totalorder %s4341_s24, 3  ;;  %p46_p7 = scmp.eq.s32.totalorder %s44_s29, 0 }
  0x15   : > { %p4361_p8 = por %p62_p5, %p61_p3  ;;  %p197_p10 = scmp.eq.s32.totalorder %s3213_s25, 3 }
  0x16   : > { %p4365_p9 = por %p191_p6, %p55_p1  ;;  %p3215_p12 = scmp.ge.s32.totalorder %s4265_s23, 4 }
  0x17   : > { %s5228_s30 = scalar_select %p4361_p8, 1, 0 }
  0x18   : > { %s5229_s6 = scalar_select %p4365_p9, 1, 0 }
  0x19   : > { %s4370_s7 = scalar_select %p46_p7, %s4253_s20, %s48_s27  }
  0x1a   : > { %p4372_p11 = por %p197_p10, %p61_p3  ;;  %213 = sbr.rel (%p3215_p12) target bundleno = 150 (0x96), region = 16 }
  0x1b   : > { %5230 = sst [smem:[#allocation21_spill]] %s4370_s7 }
  0x1c   : > { %s5231_s8 = scalar_select %p4372_p11, 1, 0 }
  0x21   : > { %s4378_s9 = sand.u32 1, %s4253_s20   ;;  %s3500_s10 = sshll.u32 %s4261_s22, 10 }
  0x22   : > { %s3216_s11 = sshll.u32 %s4378_s9, 7  ;;  %s5232_s0 = sld [smem:[#allocation22_spill]] }
  0x23   : > { %s3599_s15 = scalar_select %p4353_p4, [#allocation0], [#allocation14] }
  0x24   : > { %s221_s16 = scalar_lea.vmem [#allocation2], %s3216_s11  ;;  %s4267_s27 = smov 4096  }
  0x25   : > { %s244_s17 = sshll.u32 %s221_s16, 4  ;;  %s236_s25 = sld [smem:[%s3599_s15]]   ;;  %s245_s17 = int_to_ptr.vmem [resolvable:$true] %s244_s17 }
  0x26   : > { %3600 = sst [smem:[#allocation13]] (%p4353_p4), %s4267_s27  ;;  %s4268_s29 = smov 1024  }
  0x27   : > { %3601 = sst [smem:[#allocation13 + $0x1]] (%p4353_p4), %s4268_s29  ;;  %s4269_s26 = smov 2  }
  0x28   : > { %s231_s14 = scalar_lea.hbm %s5232_s0, %s3500_s10  ;;  %3602 = sst [smem:[#allocation13 + $0x2]] (%p4353_p4), %s4269_s26 }
  0x29   : > { %s4270_s12 = smov 512   ;;  %s4271_s11 = smov 32  }
  0x2a   : > { %3603 = sst [smem:[#allocation13 + $0x3]] (%p4353_p4), %s4270_s12  ;;  %s218_s15 = scalar_lea.sflag [#allocation3], %s4378_s9 }
  0x2b   : > { %3604 = sst [smem:[#allocation13 + $0x4]] (%p4353_p4), %s4270_s12  ;;  %s3220_s10 = sshll.u32 %s236_s25, 26 }
  0x2c   : > { %3605 = sst [smem:[#allocation13 + $0x5]] (%p4353_p4), %s4271_s11  ;;  %s3221_s13 = sadd.s32 134217728, %s3220_s10 }
  0x2d   : > { %s4272_s16 = smov [#allocation12]   ;;  %s267_s26 = sand.u32 1, %s4265_s23  }
  0x2e   : > { %3606 = dma.general (%p4353_p4), %s231_s14, 2048, %s245_s17, %s218_s15, %s4272_s16, [#allocation13], %s3221_s13, 0  }
  0x2f   : > { %s3222_s27 = sshll.u32 %s4378_s9, 11  ;;  %s3501_s29 = sshll.u32 %s4261_s22, 15 }
  0x30   : > { %s271_s0 = scalar_lea.vmem [#allocation5], %s3222_s27  ;;  %s5233_s1 = sld [smem:[#allocation23_spill]] }
  0x31   : > { %s278_s7 = sshll.u32 %s271_s0, 4  ;;  %s4414_s14 = scalar_lea.sflag [#allocation6], %s267_s26  ;;  %s4410_s7 = int_to_ptr.vmem [resolvable:$true] %s278_s7 }
  0x36   : > { %s4408_s20 = scalar_lea.hbm %s5233_s1, %s3501_s29  ;;  %s4067_s11 = scalar_lea.hbm %s5233_s1, 131072 }
  0x37   : > { %s4063_s17 = scalar_lea.hbm %s4408_s20, 32768  ;;  %p4068_p2 = scmp.lt.u32.totalorder %s4408_s20, %s5233_s1 }
  0x38   : > { %p4064_p13 = scmp.ne.s32.totalorder %s4408_s20, %s4063_s17  ;;  %p4069_p3 = scmp.lt.u32.totalorder %s4067_s11, %s4063_s17 }
  0x39   : > { %p4071_p6 = scmp.lt.u32.totalorder %s4063_s17, %s4408_s20 }
  0x3a   : > { %p4065_p0 = pnand %p4064_p13, %p4353_p4  ;;  %p4070_p5 = por %p4069_p3, %p4068_p2 }
  0x3c   : > { %p4066_p1 = pneg %p4065_p0  ;;  %p4072_p7 = por %p4071_p6, %p4070_p5 }
  0x3e   : > { %p4073_p10 = pnand %p4072_p7, %p4066_p1 }
  0x40   : > { %4076 = shalt.err (!%p4073_p10)
}
  0x41   : > { %s4077_s16 = scalar_lea.vmem %s4410_s7, 32768  ;;  %s4273_s27 = smov [#allocation5]  }
  0x42   : > { %p4078_p12 = scmp.ne.s32.totalorder %s4410_s7, %s4077_s16  ;;  %s4081_s29 = sshll.u32 %s4273_s27, 4  ;;  %s4082_s29 = int_to_ptr.vmem [resolvable:$false] %s4081_s29 }
  0x43   : > { %s4083_s12 = scalar_lea.vmem %s4082_s29, 65536  ;;  %p4084_p11 = scmp.lt.s32.totalorder %s4410_s7, %s4082_s29 }
  0x44   : > { %p4079_p13 = pnand %p4078_p12, %p4353_p4  ;;  %p4085_p9 = scmp.lt.s32.totalorder %s4083_s12, %s4077_s16 }
  0x46   : > { %p4080_p0 = pneg %p4079_p13  ;;  %p4086_p2 = por %p4085_p9, %p4084_p11 }
  0x48   : > { %p4087_p3 = pnand %p4086_p2, %p4080_p0 }
  0x4a   : > { %4090 = shalt.err (!%p4087_p3)
}
  0x4b   : > { %s5221_s25 = smov 128   ;;  %s4275_s17 = smov 8  }
  0x4c   : > { %3607 = dma.hbm_to_vmem [thread:$0]  (%p4353_p4), %s4408_s20, 32768, %s4410_s7, %s4414_s14, %s5221_s25, %s5221_s25, %s4275_s17  }
  0x4d   : > { %s3228_s0 = sshll.u32 %s4378_s9, 8  ;;  %s3503_s10 = sshll.u32 %s4261_s22, 12 }
  0x4e   : > { %s4446_s15 = scalar_lea.hbm %s5215_s3, %s3503_s10  ;;  %s311_s16 = scalar_lea.vmem [#allocation8], %s3228_s0 }
  0x4f   : > { %s318_s27 = sshll.u32 %s311_s16, 4  ;;  %s3225_s29 = sshll.u32 %s4378_s9, 1  ;;  %s4448_s27 = int_to_ptr.vmem [resolvable:$true] %s318_s27 }
  0x50   : > { %s4453_s12 = scalar_lea.sflag [#allocation9], %s267_s26  ;;  %s4091_s20 = scalar_lea.hbm %s4446_s15, 4096 }
  0x51   : > { %p4092_p9 = scmp.ne.s32.totalorder %s4446_s15, %s4091_s20  ;;  %s4095_s11 = scalar_lea.hbm %s5215_s3, 16384 }
  0x52   : > { %p4096_p5 = scmp.lt.u32.totalorder %s4446_s15, %s5215_s3  ;;  %p4097_p6 = scmp.lt.u32.totalorder %s4095_s11, %s4091_s20 }
  0x53   : > { %p4093_p11 = pnand %p4092_p9, %p4353_p4  ;;  %p4099_p10 = scmp.lt.u32.totalorder %s4091_s20, %s4446_s15 }
  0x54   : > { %p4098_p7 = por %p4097_p6, %p4096_p5 }
  0x55   : > { %p4094_p1 = pneg %p4093_p11 }
  0x56   : > { %p4100_p12 = por %p4099_p10, %p4098_p7 }
  0x58   : > { %p4101_p13 = pnand %p4100_p12, %p4094_p1 }
  0x5a   : > { %4104 = shalt.err (!%p4101_p13)
}
  0x5b   : > { %s4105_s26 = scalar_lea.vmem %s4448_s27, 4096  ;;  %s4276_s0 = smov [#allocation8]  }
  0x5c   : > { %p4106_p0 = scmp.ne.s32.totalorder %s4448_s27, %s4105_s26  ;;  %s4109_s16 = sshll.u32 %s4276_s0, 4  ;;  %s4110_s16 = int_to_ptr.vmem [resolvable:$false] %s4109_s16 }
  0x5d   : > { %s4111_s25 = scalar_lea.vmem %s4110_s16, 8192  ;;  %p4112_p9 = scmp.lt.s32.totalorder %s4448_s27, %s4110_s16 }
  0x5e   : > { %p4107_p2 = pnand %p4106_p0, %p4353_p4  ;;  %p4113_p11 = scmp.lt.s32.totalorder %s4111_s25, %s4105_s26 }
  0x60   : > { %p4108_p3 = pneg %p4107_p2  ;;  %p4114_p5 = por %p4113_p11, %p4112_p9 }
  0x62   : > { %p4115_p6 = pnand %p4114_p5, %p4108_p3 }
  0x64   : > { %4118 = shalt.err (!%p4115_p6)
}
  0x65   : > { %s5234_s20 = smov 128   ;;  %s3502_s7 = sshll.u32 %s4261_s22, 5 }
  0x66   : > { %3609 = dma.hbm_to_vmem [thread:$0]  (%p4353_p4), %s4446_s15, 4096, %s4448_s27, %s4453_s12, %s5234_s20, %s5234_s20, %s4275_s17  }
  0x67   : > { %s4484_s13 = scalar_lea.hbm %s5214_s2, %s3502_s7  ;;  %s292_s26 = scalar_lea.vmem [#allocation7], %s3225_s29 }
  0x68   : > { %s300_s0 = sshll.u32 %s292_s26, 4  ;;  %s4119_s16 = scalar_lea.hbm %s4484_s13, 32  ;;  %s301_s0 = int_to_ptr.vmem [resolvable:$true] %s300_s0 }
  0x69   : > { %p4120_p1 = scmp.ne.s32.totalorder %s4484_s13, %s4119_s16  ;;  %s4123_s27 = scalar_lea.hbm %s5214_s2, 128 }
  0x6a   : > { %p4124_p12 = scmp.lt.u32.totalorder %s4484_s13, %s5214_s2  ;;  %p4125_p13 = scmp.lt.u32.totalorder %s4123_s27, %s4119_s16 }
  0x6b   : > { %p4121_p7 = pnand %p4120_p1, %p4353_p4  ;;  %p4127_p2 = scmp.lt.u32.totalorder %s4119_s16, %s4484_s13 }
  0x6c   : > { %p4126_p0 = por %p4125_p13, %p4124_p12 }
  0x6d   : > { %p4122_p10 = pneg %p4121_p7 }
  0x6e   : > { %p4128_p3 = por %p4127_p2, %p4126_p0 }
  0x70   : > { %p4129_p9 = pnand %p4128_p3, %p4122_p10 }
  0x72   : > { %4132 = shalt.err (!%p4129_p9)
}
  0x73   : > { %s4133_s29 = scalar_lea.vmem %s301_s0, 32  ;;  %s4277_s7 = smov [#allocation7]  }
  0x74   : > { %p4134_p11 = scmp.ne.s32.totalorder %s301_s0, %s4133_s29  ;;  %s4137_s10 = sshll.u32 %s4277_s7, 4  ;;  %s4138_s10 = int_to_ptr.vmem [resolvable:$false] %s4137_s10 }
  0x75   : > { %s4139_s11 = scalar_lea.vmem %s4138_s10, 64  ;;  %p4140_p1 = scmp.lt.s32.totalorder %s301_s0, %s4138_s10 }
  0x76   : > { %p4135_p5 = pnand %p4134_p11, %p4353_p4  ;;  %p4141_p7 = scmp.lt.s32.totalorder %s4139_s11, %s4133_s29 }
  0x78   : > { %p4136_p6 = pneg %p4135_p5  ;;  %p4142_p8 = por %p4141_p7, %p4140_p1 }
  0x7a   : > { %p4143_p12 = pnand %p4142_p8, %p4136_p6 }
  0x7c   : > { %4146 = shalt.err (!%p4143_p12)
}
  0x7d   : > { %3608 = dma.hbm_to_vmem [thread:$0]  (%p4353_p4), %s4484_s13, 32, %s301_s0, %s4414_s14  }
  0x7e   : > { %s3231_s26 = sshll.u32 %s4261_s22, 4  ;;  %s331_s16 = scalar_lea.vmem [#allocation10], %s4378_s9 }
  0x7f   : > { %s338_s17 = sshll.u32 %s331_s16, 4  ;;  %s336_s25 = scalar_lea.hbm %s5216_s4, %s3231_s26  ;;  %s339_s17 = int_to_ptr.vmem [resolvable:$true] %s338_s17 }
  0x80   : > { %s4147_s20 = scalar_lea.hbm %s336_s25, 16  ;;  %s4151_s10 = scalar_lea.hbm %s5216_s4, 64 }
  0x81   : > { %p4148_p10 = scmp.ne.s32.totalorder %s336_s25, %s4147_s20  ;;  %p4152_p0 = scmp.lt.u32.totalorder %s336_s25, %s5216_s4 }
  0x82   : > { %p4153_p2 = scmp.lt.u32.totalorder %s4151_s10, %s4147_s20  ;;  %p4155_p9 = scmp.lt.u32.totalorder %s4147_s20, %s336_s25 }
  0x83   : > { %p4149_p8 = pnand %p4148_p10, %p4353_p4 }
  0x84   : > { %p4154_p3 = por %p4153_p2, %p4152_p0 }
  0x85   : > { %p4150_p13 = pneg %p4149_p8 }
  0x86   : > { %p4156_p11 = por %p4155_p9, %p4154_p3 }
  0x88   : > { %p4157_p5 = pnand %p4156_p11, %p4150_p13 }
  0x8a   : > { %4160 = shalt.err (!%p4157_p5)
}
  0x8b   : > { %s4161_s9 = scalar_lea.vmem %s339_s17, 16  ;;  %s4278_s14 = smov [#allocation10]  }
  0x8c   : > { %p4162_p6 = scmp.ne.s32.totalorder %s339_s17, %s4161_s9  ;;  %s4165_s13 = sshll.u32 %s4278_s14, 4  ;;  %s4166_s13 = int_to_ptr.vmem [resolvable:$false] %s4165_s13 }
  0x8d   : > { %s4167_s0 = scalar_lea.vmem %s4166_s13, 32  ;;  %p4168_p12 = scmp.lt.s32.totalorder %s339_s17, %s4166_s13 }
  0x8e   : > { %p4163_p1 = pnand %p4162_p6, %p4353_p4  ;;  %p4169_p10 = scmp.lt.s32.totalorder %s4167_s0, %s4161_s9 }
  0x90   : > { %p4164_p7 = pneg %p4163_p1  ;;  %p4170_p8 = por %p4169_p10, %p4168_p12 }
  0x92   : > { %p4171_p0 = pnand %p4170_p8, %p4164_p7 }
  0x94   : > { %4174 = shalt.err (!%p4171_p0)
}
  0x95   : > { %3610 = dma.hbm_to_vmem [thread:$0]  (%p4353_p4), %s336_s25, 16, %s339_s17, %s4453_s12  }
  0x96 PF: > { %p3232_p13 = scmp.ge.s32.totalorder %s4265_s23, 1  ;;  %p343_p2 = scmp.lt.s32.totalorder %s4265_s23, 5 }
  0x98   : > { %p344_p3 = pnand %p3232_p13, %p343_p2 }
  0x99   : > { %s4527_s1 = sand.u32 (!%p344_p3), 1, %s4249_s19   ;;  %p5235_p9 = scmp.ne.s32.totalorder (!%p344_p3), %s5228_s30, 0 }
  0x9a   : > { %347 = sbr.rel (%p344_p3) target bundleno = 886 (0x376), region = 40  ;;  %s3233_s26 = sshll.u32 (!%p344_p3), %s4527_s1, 7 }
  0x9b   : > { %s350_s16 = scalar_lea.sflag (!%p344_p3), [#allocation3], %s4527_s1  ;;  %s4531_s15 = scalar_lea.vmem (!%p344_p3), [#allocation2], %s3233_s26 }
  0xa1   : > { %4228 = dma.done.wait (%p5235_p9), %s350_s16, 2048  }
  0xa2   : > { %4230 = vsyncadd (%p5235_p9), %s350_s16, 4294965248  ;;  %s358_s28 = sand.u32 1, %s4341_s24   ;;  %s3234_s12 = sshll.u32 %s4527_s1, 11 }
  0xa3   : > { %s359_s17 = scalar_lea.sflag [#allocation6], %s358_s28  ;;  %s4539_s27 = scalar_lea.vmem [#allocation5], %s3234_s12 }
  0xa4   : > { %4232 = dma.done.wait (%p5235_p9), %s359_s17, 32800  }
  0xa5   : > { %4234 = vsyncadd (%p5235_p9), %s359_s17, 4294934496  ;;  %s3235_s25 = sshll.u32 %s4527_s1, 1  ;;  %s3236_s20 = sshll.u32 %s4527_s1, 8 }
  0xa6   : > { %s4549_s29 = scalar_lea.vmem [#allocation7], %s3235_s25  ;;  %s377_s7 = scalar_lea.sflag [#allocation9], %s358_s28 }
  0xa7   : > { %s4551_s24 = scalar_lea.vmem [#allocation8], %s3236_s20 }
  0xa8   : > { %4236 = dma.done.wait (%p5235_p9), %s377_s7, 4112  }
  0xa9   : > { %4238 = vsyncadd (%p5235_p9), %s377_s7, 4294963184  ;;  %v3679_v0 = vld [vmem:[%s4539_s27 + $0x4] ss:$8 sps:$4 sm:$0xff]   ;;  %v3683_v2 = vld [vmem:[%s4539_s27] ss:$8 sps:$4 sm:$0xff]   ;;  %vm580_vm0 = vcmask 1043456  }
  0xaa   : > { %v3681_v1 = vld [vmem:[%s4539_s27 + $0x404] ss:$8 sps:$4 sm:$0xff]   ;;  %2594 = vmatprep.subr.bf16.mxu1 %v3679_v0  ;;  %v3684_v3 = vld [vmem:[%s4539_s27 + $0x400] ss:$8 sps:$4 sm:$0xff]   ;;  %v3685_v4 = vld [vmem:[%s4539_s27 + $0x14] ss:$8 sps:$4 sm:$0xff]  }
  0xab   : > { %2758 = vmatprep.subr.bf16.mxu0 %v3681_v1  ;;  %2595 = vmatpush1.bf16.msra.mxu1 %v3683_v2  ;;  %v3687_v5 = vld [vmem:[%s4539_s27 + $0x414] ss:$8 sps:$4 sm:$0xff]   ;;  %v3689_v6 = vld [vmem:[%s4539_s27 + $0x10] ss:$8 sps:$4 sm:$0xff]   ;;  %v3691_v8 = vld [vmem:[%s4539_s27 + $0x24] ss:$8 sps:$4 sm:$0xff]  }
  0xac   : > { %2759 = vmatpush1.bf16.msra.mxu0 %v3684_v3  ;;  %2596 = vmatprep.subr.bf16.mxu1 %v3685_v4  ;;  %v3690_v7 = vld [vmem:[%s4539_s27 + $0x410] ss:$8 sps:$4 sm:$0xff]   ;;  %v3693_v9 = vld [vmem:[%s4539_s27 + $0x424] ss:$8 sps:$4 sm:$0xff]   ;;  %v3695_v10 = vld [vmem:[%s4539_s27 + $0x20] ss:$8 sps:$4 sm:$0xff]  }
  0xad   : > { %2760 = vmatprep.subr.bf16.mxu0 %v3687_v5  ;;  %v3696_v11 = vld [vmem:[%s4539_s27 + $0x420] ss:$8 sps:$4 sm:$0xff]   ;;  %v3697_v12 = vld [vmem:[%s4539_s27 + $0x34] ss:$8 sps:$4 sm:$0xff]   ;;  %v3701_v14 = vld [vmem:[%s4539_s27 + $0x30] ss:$8 sps:$4 sm:$0xff]  }
  0xae   : > { %v3699_v13 = vld [vmem:[%s4539_s27 + $0x434] ss:$8 sps:$4 sm:$0xff]   ;;  %v3702_v15 = vld [vmem:[%s4539_s27 + $0x430] ss:$8 sps:$4 sm:$0xff]   ;;  %v3703_v16 = vld [vmem:[%s4539_s27 + $0x44] ss:$8 sps:$4 sm:$0xff]  }
  0xaf   : > { %2597 = vmatpush1.bf16.msra.mxu1 %v3689_v6  ;;  %v3705_v17 = vld [vmem:[%s4539_s27 + $0x444] ss:$8 sps:$4 sm:$0xff]   ;;  %v3707_v18 = vld [vmem:[%s4539_s27 + $0x40] ss:$8 sps:$4 sm:$0xff]   ;;  %v3709_v20 = vld [vmem:[%s4539_s27 + $0x54] ss:$8 sps:$4 sm:$0xff]  }
  0xb0   : > { %2761 = vmatpush1.bf16.msra.mxu0 %v3690_v7  ;;  %2598 = vmatprep.subr.bf16.mxu1 %v3691_v8  ;;  %v3708_v19 = vld [vmem:[%s4539_s27 + $0x440] ss:$8 sps:$4 sm:$0xff]   ;;  %v3711_v21 = vld [vmem:[%s4539_s27 + $0x454] ss:$8 sps:$4 sm:$0xff]   ;;  %v3713_v22 = vld [vmem:[%s4539_s27 + $0x50] ss:$8 sps:$4 sm:$0xff]  }
  0xb1   : > { %2762 = vmatprep.subr.bf16.mxu0 %v3693_v9  ;;  %v3714_v23 = vld [vmem:[%s4539_s27 + $0x450] ss:$8 sps:$4 sm:$0xff]   ;;  %v3715_v24 = vld [vmem:[%s4539_s27 + $0x64] ss:$8 sps:$4 sm:$0xff]   ;;  %v3719_v26 = vld [vmem:[%s4539_s27 + $0x60] ss:$8 sps:$4 sm:$0xff]  }
  0xb2   : > { %v3717_v25 = vld [vmem:[%s4539_s27 + $0x464] ss:$8 sps:$4 sm:$0xff]   ;;  %v3720_v27 = vld [vmem:[%s4539_s27 + $0x460] ss:$8 sps:$4 sm:$0xff]   ;;  %v3721_v28 = vld [vmem:[%s4539_s27 + $0x74] ss:$8 sps:$4 sm:$0xff]  }
  0xb3   : > { %2599 = vmatpush1.bf16.msra.mxu1 %v3695_v10  ;;  %v3723_v29 = vld [vmem:[%s4539_s27 + $0x474] ss:$8 sps:$4 sm:$0xff]   ;;  %v3725_v30 = vld [vmem:[%s4539_s27 + $0x70] ss:$8 sps:$4 sm:$0xff]   ;;  %v3727_v32 = vld [vmem:[%s4539_s27 + $0x84] ss:$8 sps:$4 sm:$0xff]  }
  0xb4   : > { %2763 = vmatpush1.bf16.msra.mxu0 %v3696_v11  ;;  %2600 = vmatprep.subr.bf16.mxu1 %v3697_v12  ;;  %v3726_v31 = vld [vmem:[%s4539_s27 + $0x470] ss:$8 sps:$4 sm:$0xff]   ;;  %v3729_v33 = vld [vmem:[%s4539_s27 + $0x484] ss:$8 sps:$4 sm:$0xff]   ;;  %v3731_v34 = vld [vmem:[%s4539_s27 + $0x80] ss:$8 sps:$4 sm:$0xff]  }
  0xb5   : > { %2764 = vmatprep.subr.bf16.mxu0 %v3699_v13  ;;  %v3732_v35 = vld [vmem:[%s4539_s27 + $0x480] ss:$8 sps:$4 sm:$0xff]   ;;  %v3733_v36 = vld [vmem:[%s4539_s27 + $0x94] ss:$8 sps:$4 sm:$0xff]   ;;  %v3737_v38 = vld [vmem:[%s4539_s27 + $0x90] ss:$8 sps:$4 sm:$0xff]  }
  0xb6   : > { %v3735_v37 = vld [vmem:[%s4539_s27 + $0x494] ss:$8 sps:$4 sm:$0xff]   ;;  %v3738_v39 = vld [vmem:[%s4539_s27 + $0x490] ss:$8 sps:$4 sm:$0xff]   ;;  %v3739_v40 = vld [vmem:[%s4539_s27 + $0xa4] ss:$8 sps:$4 sm:$0xff]  }
  0xb7   : > { %2601 = vmatpush1.bf16.msra.mxu1 %v3701_v14  ;;  %v3741_v41 = vld [vmem:[%s4539_s27 + $0x4a4] ss:$8 sps:$4 sm:$0xff]   ;;  %v3743_v42 = vld [vmem:[%s4539_s27 + $0xa0] ss:$8 sps:$4 sm:$0xff]   ;;  %v3745_v44 = vld [vmem:[%s4539_s27 + $0xb4] ss:$8 sps:$4 sm:$0xff]  }
  0xb8   : > { %2765 = vmatpush1.bf16.msra.mxu0 %v3702_v15  ;;  %2602 = vmatprep.subr.bf16.mxu1 %v3703_v16  ;;  %v3744_v43 = vld [vmem:[%s4539_s27 + $0x4a0] ss:$8 sps:$4 sm:$0xff]   ;;  %v3747_v45 = vld [vmem:[%s4539_s27 + $0x4b4] ss:$8 sps:$4 sm:$0xff]   ;;  %v3749_v46 = vld [vmem:[%s4539_s27 + $0xb0] ss:$8 sps:$4 sm:$0xff]  }
  0xb9   : > { %2766 = vmatprep.subr.bf16.mxu0 %v3705_v17  ;;  %v3750_v47 = vld [vmem:[%s4539_s27 + $0x4b0] ss:$8 sps:$4 sm:$0xff]   ;;  %v436_v48 = vld [vmem:[%s4531_s15] sm:$0xff]  ;;  %v3757_v14 = vld [vmem:[%s4539_s27 + $0xd4] ss:$8 sps:$4 sm:$0xff]   ;;  %vm1265_vm1 = vcmask 1041409  }
  0xba   : > { %v440_v49 = vld [vmem:[%s4531_s15 + $0x20] sm:$0xff]  ;;  %v452_v52 = vunpack.c.l.bf16 %v436_v48  ;;  %v4609_v53 = vunpack.c.h.bf16 %v436_v48  ;;  %v438_v63 = vld [vmem:[%s4531_s15 + $0x10] sm:$0xff]  ;;  %s388_s30 = scalar_lea.vmem [#allocation10], %s4527_s1  ;;  %s3496_s10 = sshll.u32 %s4257_s21, 5 }
  0xbb   : > { %2603 = vmatpush1.bf16.msra.mxu1 %v3707_v18  ;;  %v444_v50 = vld [vmem:[%s4531_s15 + $0x40] sm:$0xff]  ;;  %v460_v55 = vunpack.c.l.bf16 %v440_v49  ;;  %v4612_v56 = vunpack.c.h.bf16 %v440_v49  ;;  %v442_v0 = vld [vmem:[%s4531_s15 + $0x30] sm:$0xff]  ;;  %v456_v6 = vunpack.c.l.bf16 %v438_v63  ;;  %v4624_v7 = vunpack.c.h.bf16 %v438_v63  ;;  %s433_s11 = scalar_lea.vmem [#allocation11], %s3235_s25  ;;  %s5164_s0 = scalar_lea.hbm %s5217_s5, %s3496_s10 }
  0xbc   : > { %2767 = vmatpush1.bf16.msra.mxu0 %v3708_v19  ;;  %2604 = vmatprep.subr.bf16.mxu1 %v3709_v20  ;;  %v448_v51 = vld [vmem:[%s4531_s15 + $0x60] sm:$0xff]  ;;  %v468_v57 = vunpack.c.l.bf16 %v444_v50  ;;  %v4614_v58 = vunpack.c.h.bf16 %v444_v50  ;;  %v516_v62 = vcombine.high %v452_v52, %v452_v52  ;;  %v581_v1 = vsel %vm580_vm0, %v452_v52, 0.0  ;;  %v446_v4 = vld [vmem:[%s4531_s15 + $0x50] sm:$0xff]  ;;  %s3047_s9 = sshll.u32 %s433_s11, 4  ;;  %s3033_s26 = scalar_lea.sflag [#allocation4], %s4527_s1  ;;  %s5166_s9 = int_to_ptr.vmem [resolvable:$true] %s3047_s9 }
  0xbd   : > { %2768 = vmatprep.subr.bf16.mxu0 %v3711_v21  ;;  %v3751_v54 = vld [vmem:[%s4539_s27 + $0xc4] ss:$8 sps:$4 sm:$0xff]   ;;  %v476_v60 = vunpack.c.l.bf16 %v448_v51  ;;  %v4617_v61 = vunpack.c.h.bf16 %v448_v51  ;;  %v524_v2 = vcombine.high %v460_v55, %v460_v55  ;;  %v450_v5 = vld [vmem:[%s4531_s15 + $0x70] sm:$0xff]  ;;  %v3755_v8 = vld [vmem:[%s4539_s27 + $0xc0] ss:$8 sps:$4 sm:$0xff]   ;;  %v4629_v12 = vunpack.c.l.bf16 %v442_v0  ;;  %s4175_s16 = scalar_lea.vmem %s5166_s9, 32 }
  0xbe   : > { %v3753_v59 = vld [vmem:[%s4539_s27 + $0x4c4] ss:$8 sps:$4 sm:$0xff]   ;;  %v532_v3 = vcombine.high %v468_v57, %v468_v57  ;;  %v3756_v9 = vld [vmem:[%s4539_s27 + $0x4c0] ss:$8 sps:$4 sm:$0xff]   ;;  %v584_v11 = vsel %vm580_vm0, %v516_v62, 0.0  ;;  %v4631_v13 = vunpack.c.h.bf16 %v442_v0  ;;  %v4636_v17 = vunpack.c.l.bf16 %v446_v4  ;;  %p4176_p4 = scmp.ne.s32.totalorder %s5166_s9, %s4175_s16  ;;  %p5236_p11 = scmp.ne.s32.totalorder %s5229_s6, 0 }
  0xbf   : > { %2605 = vmatpush1.bf16.msra.mxu1 %v3713_v22  ;;  %v540_v10 = vcombine.high %v476_v60, %v476_v60  ;;  %v585_v15 = vsel %vm580_vm0, %v524_v2, 0.0  ;;  %v4638_v18 = vunpack.c.h.bf16 %v446_v4  ;;  %v3759_v19 = vld [vmem:[%s4539_s27 + $0x4d4] ss:$8 sps:$4 sm:$0xff]   ;;  %v4642_v22 = vunpack.c.l.bf16 %v450_v5  ;;  %v3768_v49 = vld [vmem:[%s4539_s27 + $0x4e0] ss:$8 sps:$4 sm:$0xff]   ;;  %s4279_s21 = smov [#allocation11]  }
  0xc0   : > { %2769 = vmatpush1.bf16.msra.mxu0 %v3714_v23  ;;  %2606 = vmatprep.subr.bf16.mxu1 %v3715_v24  ;;  %v632_v16 = vsel %vm580_vm0, %v532_v3, 0.0  ;;  %v586_v20 = vadd.f32 %v585_v15, %v584_v11  ;;  %v4644_v23 = vunpack.c.h.bf16 %v450_v5  ;;  %v3761_v24 = vld [vmem:[%s4539_s27 + $0xd0] ss:$8 sps:$4 sm:$0xff]   ;;  %v630_v48 = vsel %vm580_vm0, %v476_v60, 0.0  ;;  %v3769_v50 = vld [vmem:[%s4539_s27 + $0xf4] ss:$8 sps:$4 sm:$0xff]   ;;  %p4177_p5 = pnand %p4176_p4, %p5236_p11 }
  0xc1   : > { %2770 = vmatprep.subr.bf16.mxu0 %v3717_v25  ;;  %v633_v21 = vsel %vm580_vm0, %v540_v10, 0.0  ;;  %v3762_v25 = vld [vmem:[%s4539_s27 + $0x4d0] ss:$8 sps:$4 sm:$0xff]   ;;  %v3771_v60 = vld [vmem:[%s4539_s27 + $0x4f4] ss:$8 sps:$4 sm:$0xff]  }
  0xc2   : > { %v3774_v10 = vld [vmem:[%s4539_s27 + $0x4f0] ss:$8 sps:$4 sm:$0xff]   ;;  %p4178_p6 = pneg %p4177_p5 }
  0xc3   : > { %2607 = vmatpush1.bf16.msra.mxu1 %v3719_v26  ;;  %v634_v26 = vadd.f32 %v633_v21, %v632_v16 }
  0xc4   : > { %2771 = vmatpush1.bf16.msra.mxu0 %v3720_v27  ;;  %2608 = vmatprep.subr.bf16.mxu1 %v3721_v28  ;;  %v520_v27 = vcombine.high %v456_v6, %v456_v6  ;;  %v528_v28 = vcombine.high %v4629_v12, %v4629_v12 }
  0xc5   : > { %2772 = vmatprep.subr.bf16.mxu0 %v3723_v29  ;;  %v536_v29 = vcombine.high %v4636_v17, %v4636_v17 }
  0xc7   : > { %2609 = vmatpush1.bf16.msra.mxu1 %v3725_v30  ;;  %v3763_v30 = vld [vmem:[%s4539_s27 + $0xe4] ss:$8 sps:$4 sm:$0xff]  }
  0xc8   : > { %2773 = vmatpush1.bf16.msra.mxu0 %v3726_v31  ;;  %2610 = vmatprep.subr.bf16.mxu1 %v3727_v32  ;;  %v684_v31 = vsel %vm580_vm0, %v586_v20, 0.0  ;;  %v544_v32 = vcombine.high %v4642_v22, %v4642_v22  ;;  %v3777_v20 = vld [vmem:[%s4539_s27 + $0x104] ss:$8 sps:$4 sm:$0xff]  }
  0xc9   : > { %2774 = vmatprep.subr.bf16.mxu0 %v3729_v33  ;;  %v582_v33 = vsel %vm580_vm0, %v460_v55, 0.0  ;;  %v605_v55 = vsel %vm580_vm0, %v456_v6, 0.0 }
  0xcb   : > { %2611 = vmatpush1.bf16.msra.mxu1 %v3731_v34  ;;  %v629_v34 = vsel %vm580_vm0, %v468_v57, 0.0 }
  0xcc   : > { %2775 = vmatpush1.bf16.msra.mxu0 %v3732_v35  ;;  %2612 = vmatprep.subr.bf16.mxu1 %v3733_v36  ;;  %v3765_v35 = vld [vmem:[%s4539_s27 + $0x4e4] ss:$8 sps:$4 sm:$0xff]   ;;  %v685_v36 = vrot.slane %v684_v31, 4 }
  0xcd   : > { %2776 = vmatprep.subr.bf16.mxu0 %v3735_v37  ;;  %v796_v37 = vsel %vm580_vm0, %v634_v26, 0.0 }
  0xcf   : > { %2613 = vmatpush1.bf16.msra.mxu1 %v3737_v38  ;;  %v608_v38 = vsel %vm580_vm0, %v520_v27, 0.0  ;;  %v3780_v27 = vld [vmem:[%s4539_s27 + $0x504] ss:$8 sps:$4 sm:$0xff]  }
  0xd0   : > { %2777 = vmatpush1.bf16.msra.mxu0 %v3738_v39  ;;  %2614 = vmatprep.subr.bf16.mxu1 %v3739_v40  ;;  %v609_v39 = vsel %vm580_vm0, %v528_v28, 0.0  ;;  %v797_v40 = vrot.slane %v796_v37, 4 }
  0xd1   : > { %2778 = vmatprep.subr.bf16.mxu0 %v3741_v41  ;;  %v610_v41 = vadd.f32 %v609_v39, %v608_v38 }
  0xd2   : > { %v798_v51 = vadd.f32 %v797_v40, %v796_v37 }
  0xd3   : > { %2615 = vmatpush1.bf16.msra.mxu1 %v3743_v42  ;;  %v656_v42 = vsel %vm580_vm0, %v536_v29, 0.0  ;;  %v740_v52 = vsel %vm580_vm0, %v610_v41, 0.0  ;;  %v654_v29 = vsel %vm580_vm0, %v4642_v22, 0.0 }
  0xd4   : > { %2779 = vmatpush1.bf16.msra.mxu0 %v3744_v43  ;;  %2616 = vmatprep.subr.bf16.mxu1 %v3745_v44  ;;  %v657_v43 = vsel %vm580_vm0, %v544_v32, 0.0  ;;  %v3767_v44 = vld [vmem:[%s4539_s27 + $0xe0] ss:$8 sps:$4 sm:$0xff]   ;;  %v799_v0 = vrot.slane %v798_v51, 2 }
  0xd5   : > { %2780 = vmatprep.subr.bf16.mxu0 %v3747_v45  ;;  %v686_v45 = vadd.f32 %v685_v36, %v684_v31 }
  0xd6   : > { %v800_v11 = vadd.f32 %v799_v0, %v798_v51 }
  0xd7   : > { %2617 = vmatpush1.bf16.msra.mxu1 %v3749_v46  ;;  %v658_v46 = vadd.f32 %v657_v43, %v656_v42  ;;  %v687_v57 = vrot.slane %v686_v45, 2 }
  0xd8   : > { %2781 = vmatpush1.bf16.msra.mxu0 %v3750_v47  ;;  %2618 = vmatprep.subr.bf16.mxu1 %v3751_v54  ;;  %v583_v47 = vadd.f32 %v582_v33, %v581_v1  ;;  %v631_v54 = vadd.f32 %v630_v48, %v629_v34  ;;  %v801_v26 = vrot.slane %v800_v11, 1 }
  0xd9   : > { %2782 = vmatprep.subr.bf16.mxu0 %v3753_v59  ;;  %v741_v59 = vrot.slane %v740_v52, 4  ;;  %v852_v62 = vsel %vm580_vm0, %v658_v46, 0.0  ;;  %v688_v4 = vadd.f32 %v687_v57, %v686_v45  ;;  %v517_v57 = vcombine.high %v4609_v53, %v4609_v53 }
  0xda   : > { %v677_v63 = vsel %vm580_vm0, %v583_v47, 0.0  ;;  %v853_v1 = vrot.slane %v852_v62, 4  ;;  %v789_v3 = vsel %vm580_vm0, %v631_v54, 0.0  ;;  %v802_v34 = vadd.f32 %v801_v26, %v800_v11 }
  0xdb   : > { %2619 = vmatpush1.bf16.msra.mxu1 %v3755_v8  ;;  %v678_v2 = vrot.slane %v677_v63, 4  ;;  %v742_v5 = vadd.f32 %v741_v59, %v740_v52  ;;  %v790_v6 = vrot.slane %v789_v3, 4  ;;  %v606_v8 = vsel %vm580_vm0, %v4629_v12, 0.0 }
  0xdc   : > { %2783 = vmatpush1.bf16.msra.mxu0 %v3756_v9  ;;  %2620 = vmatprep.subr.bf16.mxu1 %v3757_v14  ;;  %v3773_v9 = vld [vmem:[%s4539_s27 + $0xf0] ss:$8 sps:$4 sm:$0xff]   ;;  %v854_v14 = vadd.f32 %v853_v1, %v852_v62  ;;  %v607_v16 = vadd.f32 %v606_v8, %v605_v55  ;;  %v918_v41 = vpack.c.bf16 %v802_v34, %v802_v34 }
  0xdd   : > { %2784 = vmatprep.subr.bf16.mxu0 %v3759_v19  ;;  %v679_v15 = vadd.f32 %v678_v2, %v677_v63  ;;  %v689_v19 = vrot.slane %v688_v4, 1  ;;  %v743_v21 = vrot.slane %v742_v5, 2  ;;  %v525_v8 = vcombine.high %v4612_v56, %v4612_v56 }
  0xde   : > { %v855_v12 = vrot.slane %v854_v14, 2  ;;  %v733_v37 = vsel %vm580_vm0, %v607_v16, 0.0  ;;  %v1250_v48 = vunpack.c.l.b16 %v918_v41  ;;  %v533_v11 = vcombine.high %v4614_v58, %v4614_v58 }
  0xdf   : > { %2621 = vmatpush1.bf16.msra.mxu1 %v3761_v24  ;;  %v791_v24 = vadd.f32 %v790_v6, %v789_v3  ;;  %v680_v28 = vrot.slane %v679_v15, 2  ;;  %v744_v31 = vadd.f32 %v743_v21, %v742_v5  ;;  %v734_v40 = vrot.slane %v733_v37, 4  ;;  %v3775_v21 = vld [vmem:[%s4539_s27 + $0x100] ss:$8 sps:$4 sm:$0xff]  }
  0xe0   : > { %2785 = vmatpush1.bf16.msra.mxu0 %v3762_v25  ;;  %2622 = vmatprep.subr.bf16.mxu1 %v3763_v30  ;;  %v653_v25 = vsel %vm580_vm0, %v4636_v17, 0.0  ;;  %v690_v30 = vadd.f32 %v689_v19, %v688_v4  ;;  %v590_v19 = vsel %vm580_vm0, %v517_v57, 0.0 }
  0xe1   : > { %2786 = vmatprep.subr.bf16.mxu0 %v3765_v35  ;;  %v792_v32 = vrot.slane %v791_v24, 2  ;;  %v655_v33 = vadd.f32 %v654_v29, %v653_v25  ;;  %v856_v35 = vadd.f32 %v855_v12, %v854_v14  ;;  %v681_v36 = vadd.f32 %v680_v28, %v679_v15  ;;  %v3783_v29 = vld [vmem:[%s4539_s27 + $0x114] ss:$8 sps:$4 sm:$0xff]  }
  0xe2   : > { %v902_v17 = vpack.c.bf16 %v690_v30, %v690_v30  ;;  %v745_v38 = vrot.slane %v744_v31, 1  ;;  %v735_v47 = vadd.f32 %v734_v40, %v733_v37  ;;  %v541_v14 = vcombine.high %v4617_v61, %v4617_v61 }
  0xe3   : > { %2623 = vmatpush1.bf16.msra.mxu1 %v3767_v44  ;;  %v793_v39 = vadd.f32 %v792_v32, %v791_v24  ;;  %v857_v42 = vrot.slane %v856_v35, 1  ;;  %v682_v22 = vrot.slane %v681_v36, 1  ;;  %v845_v43 = vsel %vm580_vm0, %v655_v33, 0.0 }
  0xe4   : > { %2787 = vmatpush1.bf16.msra.mxu0 %v3768_v49  ;;  %2624 = vmatprep.subr.bf16.mxu1 %v3769_v50  ;;  %v1234_v44 = vunpack.c.l.b16 %v902_v17  ;;  %v746_v45 = vadd.f32 %v745_v38, %v744_v31  ;;  %v846_v51 = vrot.slane %v845_v43, 4  ;;  %v736_v55 = vrot.slane %v735_v47, 2  ;;  %v3781_v17 = vld [vmem:[%s4539_s27 + $0x110] ss:$8 sps:$4 sm:$0xff]  }
  0xe5   : > { %2788 = vmatprep.subr.bf16.mxu0 %v3771_v60  ;;  %v794_v46 = vrot.slane %v793_v39, 1  ;;  %v858_v49 = vadd.f32 %v857_v42, %v856_v35  ;;  %v683_v50 = vadd.f32 %v682_v22, %v681_v36  ;;  %v521_v30 = vcombine.high %v4624_v7, %v4624_v7 }
  0xe6   : > { %v910_v52 = vpack.c.bf16 %v746_v45, %v746_v45  ;;  %v1267_v59 = vsel %vm1265_vm1, %v1250_v48, %v1234_v44  ;;  %v847_v60 = vadd.f32 %v846_v51, %v845_v43  ;;  %v737_v3 = vadd.f32 %v736_v55, %v735_v47  ;;  %v3789_v43 = vld [vmem:[%s4539_s27 + $0x124] ss:$8 sps:$4 sm:$0xff]   ;;  %v3787_v51 = vld [vmem:[%s4539_s27 + $0x120] ss:$8 sps:$4 sm:$0xff]  }
  0xe7   : > { %2625 = vmatpush1.bf16.msra.mxu1 %v3773_v9  ;;  %v795_v54 = vadd.f32 %v794_v46, %v793_v39  ;;  %v926_v62 = vpack.c.bf16 %v858_v49, %v858_v49  ;;  %v901_v63 = vpack.c.bf16 %v683_v50, %v683_v50  ;;  %v1283_v0 = vpack.c.b16 %v1267_v59, %v1267_v59  ;;  %v3778_v55 = vld [vmem:[%s4539_s27 + $0x500] ss:$8 sps:$4 sm:$0xff]   ;;  %v3795_v59 = vld [vmem:[%s4539_s27 + $0x134] ss:$8 sps:$4 sm:$0xff]  }
  0xe8   : > { %2789 = vmatpush1.bf16.msra.mxu0 %v3774_v10  ;;  %2635 = vmatprep.subr.bf16.mxu1 %v3777_v20  ;;  %v1242_v1 = vunpack.c.l.b16 %v910_v52  ;;  %v848_v6 = vrot.slane %v847_v60, 2  ;;  %v738_v10 = vrot.slane %v737_v3, 1  ;;  %v591_v20 = vsel %vm580_vm0, %v525_v8, 0.0 }
  0xe9   : > { %2799 = vmatprep.subr.bf16.mxu0 %v3780_v27  ;;  %v917_v2 = vpack.c.bf16 %v795_v54, %v795_v54  ;;  %v1258_v4 = vunpack.c.l.b16 %v926_v62  ;;  %v1233_v5 = vunpack.c.l.b16 %v901_v63  ;;  %2626 = vmatprep.mubr.bf16.mxu1 %v1283_v0  ;;  %v592_v12 = vadd.f32 %v591_v20, %v590_v19 }
  0xea   : > { %v849_v16 = vadd.f32 %v848_v6, %v847_v60  ;;  %v739_v26 = vadd.f32 %v738_v10, %v737_v3  ;;  %v529_v31 = vcombine.high %v4631_v13, %v4631_v13  ;;  %v638_v33 = vsel %vm580_vm0, %v533_v11, 0.0  ;;  %v3793_v6 = vld [vmem:[%s4539_s27 + $0x130] ss:$8 sps:$4 sm:$0xff]  }
  0xeb   : > { %v1249_v9 = vunpack.c.l.b16 %v917_v2  ;;  %v1275_v15 = vsel %vm1265_vm1, %v1258_v4, %v1242_v1  ;;  %v639_v35 = vsel %vm580_vm0, %v541_v14, 0.0  ;;  %v698_v36 = vsel %vm580_vm0, %v592_v12, 0.0  ;;  %v3786_v1 = vld [vmem:[%s4539_s27 + $0x514] ss:$8 sps:$4 sm:$0xff]   ;;  %v3784_v11 = vld [vmem:[%s4539_s27 + $0x510] ss:$8 sps:$4 sm:$0xff]  }
  0xec   : > { %v1291_v24 = vpack.c.b16 %v1275_v15, %v1275_v15  ;;  %v850_v28 = vrot.slane %v849_v16, 1  ;;  %v909_v32 = vpack.c.bf16 %v739_v26, %v739_v26  ;;  %v537_v37 = vcombine.high %v4638_v18, %v4638_v18  ;;  %v3801_v14 = vld [vmem:[%s4539_s27 + $0x144] ss:$8 sps:$4 sm:$0xff]   ;;  %v3799_v26 = vld [vmem:[%s4539_s27 + $0x140] ss:$8 sps:$4 sm:$0xff]  }
  0xed   : > { %v1266_v25 = vsel %vm1265_vm1, %v1249_v9, %v1233_v5  ;;  %v640_v38 = vadd.f32 %v639_v35, %v638_v33  ;;  %v699_v39 = vrot.slane %v698_v36, 4  ;;  %v545_v40 = vcombine.high %v4644_v23, %v4644_v23  ;;  %v3798_v33 = vld [vmem:[%s4539_s27 + $0x534] ss:$8 sps:$4 sm:$0xff]  }
  0xee   : > { %v1282_v27 = vpack.c.b16 %v1266_v25, %v1266_v25  ;;  %2790 = vmatprep.mubr.bf16.mxu0 %v1291_v24  ;;  %v851_v34 = vadd.f32 %v850_v28, %v849_v16  ;;  %v614_v41 = vsel %vm580_vm0, %v521_v30, 0.0  ;;  %v1241_v22 = vunpack.c.l.b16 %v909_v32  ;;  %v3792_v16 = vld [vmem:[%s4539_s27 + $0x524] ss:$8 sps:$4 sm:$0xff]   ;;  %v3790_v30 = vld [vmem:[%s4539_s27 + $0x520] ss:$8 sps:$4 sm:$0xff]  }
  0xef   : > { %v615_v44 = vsel %vm580_vm0, %v529_v31, 0.0  ;;  %v700_v45 = vadd.f32 %v699_v39, %v698_v36  ;;  %v810_v46 = vsel %vm580_vm0, %v640_v38, 0.0  ;;  %v662_v50 = vsel %vm580_vm0, %v537_v37, 0.0  ;;  %v3807_v31 = vld [vmem:[%s4539_s27 + $0x154] ss:$8 sps:$4 sm:$0xff]  }
  0xf0   : > { %2627 = vmatmul.mubr.bf16.vlgmr.msra.gmra.mrb[0].mxu1 %v1282_v27  ;;  %v925_v42 = vpack.c.bf16 %v851_v34, %v851_v34  ;;  %v616_v47 = vadd.f32 %v615_v44, %v614_v41  ;;  %v811_v49 = vrot.slane %v810_v46, 4  ;;  %v663_v54 = vsel %vm580_vm0, %v545_v40, 0.0  ;;  %v3805_v38 = vld [vmem:[%s4539_s27 + $0x150] ss:$8 sps:$4 sm:$0xff]  }
  0xf1   : > { %2636 = vmatpush1.bf16.msra.mxu1 %v3775_v21  ;;  %v701_v52 = vrot.slane %v700_v45, 2  ;;  %v664_v63 = vadd.f32 %v663_v54, %v662_v50  ;;  %v587_v25 = vsel %vm580_vm0, %v4609_v53, 0.0  ;;  %v635_v35 = vsel %vm580_vm0, %v4614_v58, 0.0  ;;  %v3796_v41 = vld [vmem:[%s4539_s27 + $0x530] ss:$8 sps:$4 sm:$0xff]  }
  0xf2   : > { %2637 = vmatprep.subr.bf16.mxu1 %v3783_v29  ;;  %v1257_v48 = vunpack.c.l.b16 %v925_v42  ;;  %v812_v62 = vadd.f32 %v811_v49, %v810_v46  ;;  %v754_v60 = vsel %vm580_vm0, %v616_v47, 0.0  ;;  %v588_v29 = vsel %vm580_vm0, %v4612_v56, 0.0  ;;  %v3813_v42 = vld [vmem:[%s4539_s27 + $0x164] ss:$8 sps:$4 sm:$0xff]   ;;  %v3802_v46 = vld [vmem:[%s4539_s27 + $0x540] ss:$8 sps:$4 sm:$0xff]  }
  0xf3   : > { %v702_v2 = vadd.f32 %v701_v52, %v700_v45  ;;  %v755_v3 = vrot.slane %v754_v60, 4  ;;  %v866_v5 = vsel %vm580_vm0, %v664_v63, 0.0  ;;  %v636_v56 = vsel %vm580_vm0, %v4617_v61, 0.0  ;;  %v3819_v49 = vld [vmem:[%s4539_s27 + $0x174] ss:$8 sps:$4 sm:$0xff]  }
  0xf4   : > { %v1274_v57 = vsel %vm1265_vm1, %v1257_v48, %v1241_v22  ;;  %v813_v4 = vrot.slane %v812_v62, 2  ;;  %v867_v10 = vrot.slane %v866_v5, 4  ;;  %v637_v58 = vadd.f32 %v636_v56, %v635_v35  ;;  %v3811_v48 = vld [vmem:[%s4539_s27 + $0x160] ss:$8 sps:$4 sm:$0xff]   ;;  %v3810_v63 = vld [vmem:[%s4539_s27 + $0x554] ss:$8 sps:$4 sm:$0xff]  }
  0xf5   : > { %2638 = vmatpush1.bf16.msra.mxu1 %v3781_v17  ;;  %v1290_v0 = vpack.c.b16 %v1274_v57, %v1274_v57  ;;  %v703_v8 = vrot.slane %v702_v2, 1  ;;  %v756_v9 = vadd.f32 %v755_v3, %v754_v60  ;;  %v589_v17 = vadd.f32 %v588_v29, %v587_v25  ;;  %v3832_v35 = vld [vmem:[%s4539_s27 + $0x590] ss:$8 sps:$4 sm:$0xff]  }
  0xf6   : > { %2639 = vmatprep.subr.bf16.mxu1 %v3789_v43  ;;  %v814_v15 = vadd.f32 %v813_v4, %v812_v62  ;;  %v868_v21 = vadd.f32 %v867_v10, %v866_v5  ;;  %v3804_v43 = vld [vmem:[%s4539_s27 + $0x544] ss:$8 sps:$4 sm:$0xff]   ;;  %v611_v54 = vsel %vm580_vm0, %v4624_v7, 0.0  ;;  %v612_v57 = vsel %vm580_vm0, %v4631_v13, 0.0 }
  0xf7   : > { %2791 = vmatmul.mubr.bf16.vlgmr.msra.gmra.mrb[0].mxu0 %v1290_v0  ;;  %v704_v19 = vadd.f32 %v703_v8, %v702_v2  ;;  %v757_v20 = vrot.slane %v756_v9, 2  ;;  %v691_v61 = vsel %vm580_vm0, %v589_v17, 0.0  ;;  %v660_v62 = vsel %vm580_vm0, %v4644_v23, 0.0  ;;  %v3808_v0 = vld [vmem:[%s4539_s27 + $0x550] ss:$8 sps:$4 sm:$0xff]  }
  0xf8   : > { %2800 = vmatpush1.bf16.msra.mxu0 %v3778_v55  ;;  %v815_v24 = vrot.slane %v814_v15, 1  ;;  %v869_v28 = vrot.slane %v868_v21, 2  ;;  %v803_v55 = vsel %vm580_vm0, %v637_v58, 0.0  ;;  %v692_v60 = vrot.slane %v691_v61, 4  ;;  %v3825_v23 = vld [vmem:[%s4539_s27 + $0x184] ss:$8 sps:$4 sm:$0xff]  }
  0xf9   : > { %2640 = vmatpush1.bf16.msra.mxu1 %v3787_v51  ;;  %2801 = vmatprep.subr.bf16.mxu0 %v3786_v1  ;;  %v904_v12 = vpack.c.bf16 %v704_v19, %v704_v19  ;;  %v758_v27 = vadd.f32 %v757_v20, %v756_v9  ;;  %v3817_v1 = vld [vmem:[%s4539_s27 + $0x170] ss:$8 sps:$4 sm:$0xff]   ;;  %v804_v2 = vrot.slane %v803_v55, 4  ;;  %v613_v3 = vadd.f32 %v612_v57, %v611_v54  ;;  %v3816_v5 = vld [vmem:[%s4539_s27 + $0x564] ss:$8 sps:$4 sm:$0xff]  }
  0xfa   : > { %2641 = vmatprep.subr.bf16.mxu1 %v3795_v59  ;;  %v816_v32 = vadd.f32 %v815_v24, %v814_v15  ;;  %v870_v53 = vadd.f32 %v869_v28, %v868_v21  ;;  %v659_v59 = vsel %vm580_vm0, %v4638_v18, 0.0  ;;  %v3823_v8 = vld [vmem:[%s4539_s27 + $0x180] ss:$8 sps:$4 sm:$0xff]   ;;  %v693_v9 = vadd.f32 %v692_v60, %v691_v61  ;;  %v3831_v15 = vld [vmem:[%s4539_s27 + $0x194] ss:$8 sps:$4 sm:$0xff]  }
  0xfb   : > { %v759_v34 = vrot.slane %v758_v27, 1  ;;  %v1236_v37 = vunpack.c.l.b16 %v904_v12  ;;  %v661_v18 = vadd.f32 %v660_v62, %v659_v59  ;;  %v805_v10 = vadd.f32 %v804_v2, %v803_v55  ;;  %v3820_v19 = vld [vmem:[%s4539_s27 + $0x570] ss:$8 sps:$4 sm:$0xff]   ;;  %v3837_v12 = vld [vmem:[%s4539_s27 + $0x1a4] ss:$8 sps:$4 sm:$0xff]  }
  0xfc   : > { %2802 = vmatpush1.bf16.msra.mxu0 %v3784_v11  ;;  %v920_v36 = vpack.c.bf16 %v816_v32, %v816_v32  ;;  %v871_v40 = vrot.slane %v870_v53, 1  ;;  %v747_v11 = vsel %vm580_vm0, %v613_v3, 0.0  ;;  %v3829_v24 = vld [vmem:[%s4539_s27 + $0x190] ss:$8 sps:$4 sm:$0xff]   ;;  %v694_v25 = vrot.slane %v693_v9, 2 }
  0xfd   : > { %2642 = vmatpush1.bf16.msra.mxu1 %v3793_v6  ;;  %2803 = vmatprep.subr.bf16.mxu0 %v3792_v16  ;;  %v760_v39 = vadd.f32 %v759_v34, %v758_v27  ;;  %v3814_v6 = vld [vmem:[%s4539_s27 + $0x560] ss:$8 sps:$4 sm:$0xff]   ;;  %v3822_v16 = vld [vmem:[%s4539_s27 + $0x574] ss:$8 sps:$4 sm:$0xff]   ;;  %v748_v20 = vrot.slane %v747_v11, 4 }
  0xfe   : > { %2643 = vmatprep.subr.bf16.mxu1 %v3801_v14  ;;  %v1252_v22 = vunpack.c.l.b16 %v920_v36  ;;  %v872_v44 = vadd.f32 %v871_v40, %v870_v53  ;;  %v859_v14 = vsel %vm580_vm0, %v661_v18, 0.0  ;;  %v3828_v27 = vld [vmem:[%s4539_s27 + $0x584] ss:$8 sps:$4 sm:$0xff]   ;;  %v695_v32 = vadd.f32 %v694_v25, %v693_v9  ;;  %v3843_v34 = vld [vmem:[%s4539_s27 + $0x1b4] ss:$8 sps:$4 sm:$0xff]  }
  0xff   : > { %v912_v45 = vpack.c.bf16 %v760_v39, %v760_v39  ;;  %v860_v21 = vrot.slane %v859_v14, 4  ;;  %v749_v28 = vadd.f32 %v748_v20, %v747_v11  ;;  %v3834_v53 = vld [vmem:[%s4539_s27 + $0x594] ss:$8 sps:$4 sm:$0xff]   ;;  %v3841_v17 = vld [vmem:[%s4539_s27 + $0x1b0] ss:$8 sps:$4 sm:$0xff]   ;;  %v4811_v9 = vld [vmem:[%s4531_s15 + $0x68] sm:$0xff] }
 0x100   : > { %2804 = vmatpush1.bf16.msra.mxu0 %v3790_v30  ;;  %v1269_v47 = vsel %vm1265_vm1, %v1252_v22, %v1236_v37  ;;  %v928_v51 = vpack.c.bf16 %v872_v44, %v872_v44  ;;  %v3826_v30 = vld [vmem:[%s4539_s27 + $0x580] ss:$8 sps:$4 sm:$0xff]   ;;  %v696_v56 = vrot.slane %v695_v32, 1  ;;  %v3849_v39 = vld [vmem:[%s4539_s27 + $0x1c4] ss:$8 sps:$4 sm:$0xff]   ;;  %v4828_v25 = vld [vmem:[%s4531_s15 + $0x18] sm:$0xff] }
 0x101   : > { %2644 = vmatpush1.bf16.msra.mxu1 %v3799_v26  ;;  %2805 = vmatprep.subr.bf16.mxu0 %v3798_v33  ;;  %v1285_v50 = vpack.c.b16 %v1269_v47, %v1269_v47  ;;  %v1244_v52 = vunpack.c.l.b16 %v912_v45  ;;  %v806_v26 = vrot.slane %v805_v10, 2  ;;  %v861_v29 = vadd.f32 %v860_v21, %v859_v14  ;;  %v3840_v40 = vld [vmem:[%s4539_s27 + $0x5a4] ss:$8 sps:$4 sm:$0xff]   ;;  %v3838_v22 = vld [vmem:[%s4539_s27 + $0x5a0] ss:$8 sps:$4 sm:$0xff]  }
 0x102   : > { %2645 = vmatprep.subr.bf16.mxu1 %v3807_v31  ;;  %v1260_v7 = vunpack.c.l.b16 %v928_v51  ;;  %v3835_v31 = vld [vmem:[%s4539_s27 + $0x1a0] ss:$8 sps:$4 sm:$0xff]   ;;  %v750_v36 = vrot.slane %v749_v28, 2  ;;  %v3855_v45 = vld [vmem:[%s4539_s27 + $0x1d4] ss:$8 sps:$4 sm:$0xff]  }
 0x103   : > { %2667 = vmatprep.mubr.bf16.mxu1 %v1285_v50  ;;  %v807_v33 = vadd.f32 %v806_v26, %v805_v10  ;;  %v862_v37 = vrot.slane %v861_v29, 2  ;;  %v3847_v58 = vld [vmem:[%s4539_s27 + $0x1c0] ss:$8 sps:$4 sm:$0xff]   ;;  %v3852_v54 = vld [vmem:[%s4539_s27 + $0x5c4] ss:$8 sps:$4 sm:$0xff]  }
 0x104   : > { %2806 = vmatpush1.bf16.msra.mxu0 %v3796_v41  ;;  %v1277_v13 = vsel %vm1265_vm1, %v1260_v7, %v1244_v52  ;;  %v751_v41 = vadd.f32 %v750_v36, %v749_v28  ;;  %v3861_v52 = vld [vmem:[%s4539_s27 + $0x1e4] ss:$8 sps:$4 sm:$0xff]   ;;  %v3850_v59 = vld [vmem:[%s4539_s27 + $0x5c0] ss:$8 sps:$4 sm:$0xff]   ;;  %v3867_v60 = vld [vmem:[%s4539_s27 + $0x1f4] ss:$8 sps:$4 sm:$0xff]  }
 0x105   : > { %2646 = vmatpush1.bf16.msra.mxu1 %v3805_v38  ;;  %2807 = vmatprep.subr.bf16.mxu0 %v3804_v43  ;;  %v1293_v4 = vpack.c.b16 %v1277_v13, %v1277_v13  ;;  %v808_v38 = vrot.slane %v807_v33, 1  ;;  %v697_v43 = vadd.f32 %v696_v56, %v695_v32  ;;  %v3859_v62 = vld [vmem:[%s4539_s27 + $0x1e0] ss:$8 sps:$4 sm:$0xff]   ;;  %v3864_v3 = vld [vmem:[%s4539_s27 + $0x5e4] ss:$8 sps:$4 sm:$0xff]   ;;  %v4837_v28 = vld [vmem:[%s4531_s15 + $0x38] sm:$0xff] }
 0x106   : > { %2647 = vmatprep.subr.bf16.mxu1 %v3813_v42  ;;  %v863_v42 = vadd.f32 %v862_v37, %v861_v29  ;;  %v752_v47 = vrot.slane %v751_v41, 1  ;;  %v3865_v18 = vld [vmem:[%s4539_s27 + $0x1f0] ss:$8 sps:$4 sm:$0xff]   ;;  %v3879_v32 = vld [vmem:[%s4539_s27 + $0x214] ss:$8 sps:$4 sm:$0xff]  }
 0x107   : > { %2831 = vmatprep.mubr.bf16.mxu0 %v1293_v4  ;;  %v809_v44 = vadd.f32 %v808_v38, %v807_v33  ;;  %v903_v50 = vpack.c.bf16 %v697_v43, %v697_v43  ;;  %v4840_v29 = vld [vmem:[%s4531_s15 + $0x58] sm:$0xff] }
 0x108   : > { %2808 = vmatpush1.bf16.msra.mxu0 %v3802_v46  ;;  %v3846_v46 = vld [vmem:[%s4539_s27 + $0x5b4] ss:$8 sps:$4 sm:$0xff]   ;;  %v864_v61 = vrot.slane %v863_v42, 1  ;;  %v753_v55 = vadd.f32 %v752_v47, %v751_v41  ;;  %v3877_v43 = vld [vmem:[%s4539_s27 + $0x210] ss:$8 sps:$4 sm:$0xff]  }
 0x109   : > { %2648 = vmatpush1.bf16.msra.mxu1 %v3811_v48  ;;  %2809 = vmatprep.subr.bf16.mxu0 %v3810_v63  ;;  %v3844_v48 = vld [vmem:[%s4539_s27 + $0x5b0] ss:$8 sps:$4 sm:$0xff]   ;;  %v919_v51 = vpack.c.bf16 %v809_v44, %v809_v44  ;;  %v1235_v63 = vunpack.c.l.b16 %v903_v50  ;;  %v3870_v36 = vld [vmem:[%s4539_s27 + $0x5f4] ss:$8 sps:$4 sm:$0xff]  }
 0x10a   : > { %2649 = vmatprep.subr.bf16.mxu1 %v3819_v49  ;;  %v3853_v49 = vld [vmem:[%s4539_s27 + $0x1d0] ss:$8 sps:$4 sm:$0xff]   ;;  %v865_v57 = vadd.f32 %v864_v61, %v863_v42  ;;  %v911_v13 = vpack.c.bf16 %v753_v55, %v753_v55  ;;  %v3885_v61 = vld [vmem:[%s4539_s27 + $0x224] ss:$8 sps:$4 sm:$0xff]  }
 0x10b   : > { %v1251_v7 = vunpack.c.l.b16 %v919_v51 }
 0x10c   : > { %2810 = vmatpush1.bf16.msra.mxu0 %v3808_v0  ;;  %v3858_v0 = vld [vmem:[%s4539_s27 + $0x5d4] ss:$8 sps:$4 sm:$0xff]   ;;  %v927_v2 = vpack.c.bf16 %v865_v57, %v865_v57  ;;  %v1243_v20 = vunpack.c.l.b16 %v911_v13  ;;  %v3874_v57 = vld [vmem:[%s4539_s27 + $0x600] ss:$8 sps:$4 sm:$0xff]  }
 0x10d   : > { %2650 = vmatpush1.bf16.msra.mxu1 %v3817_v1  ;;  %2811 = vmatprep.subr.bf16.mxu0 %v3816_v5  ;;  %v3856_v1 = vld [vmem:[%s4539_s27 + $0x5d0] ss:$8 sps:$4 sm:$0xff]   ;;  %v1268_v4 = vsel %vm1265_vm1, %v1251_v7, %v1235_v63  ;;  %v4802_v5 = vld [vmem:[%s4531_s15 + $0x8] sm:$0xff] }
 0x10e   : > { %2651 = vmatprep.subr.bf16.mxu1 %v3825_v23  ;;  %v3873_v23 = vld [vmem:[%s4539_s27 + $0x204] ss:$8 sps:$4 sm:$0xff]   ;;  %v4814_v10 = vunpack.c.l.bf16 %v4802_v5  ;;  %v1259_v21 = vunpack.c.l.b16 %v927_v2 }
 0x110   : > { %2812 = vmatpush1.bf16.msra.mxu0 %v3814_v6  ;;  %v4805_v6 = vld [vmem:[%s4531_s15 + $0x28] sm:$0xff]  ;;  %v518_v26 = vcombine.high %v4814_v10, %v4814_v10  ;;  %v1276_v47 = vsel %vm1265_vm1, %v1259_v21, %v1243_v20  ;;  %v593_v13 = vsel %vm580_vm0, %v4814_v10, 0.0 }
 0x111   : > { %2652 = vmatpush1.bf16.msra.mxu1 %v3823_v8  ;;  %2813 = vmatprep.subr.bf16.mxu0 %v3822_v16  ;;  %v4808_v8 = vld [vmem:[%s4531_s15 + $0x48] sm:$0xff]  ;;  %v4817_v11 = vunpack.c.l.bf16 %v4805_v6  ;;  %v1292_v7 = vpack.c.b16 %v1276_v47, %v1276_v47 }
 0x112   : > { %2653 = vmatprep.subr.bf16.mxu1 %v3831_v15  ;;  %v4820_v14 = vunpack.c.l.bf16 %v4808_v8  ;;  %v3862_v15 = vld [vmem:[%s4539_s27 + $0x5e0] ss:$8 sps:$4 sm:$0xff]   ;;  %v596_v37 = vsel %vm580_vm0, %v518_v26, 0.0  ;;  %v3880_v26 = vld [vmem:[%s4539_s27 + $0x610] ss:$8 sps:$4 sm:$0xff]  }
 0x113   : > { %v3871_v16 = vld [vmem:[%s4539_s27 + $0x200] ss:$8 sps:$4 sm:$0xff]  }
 0x114   : > { %2814 = vmatpush1.bf16.msra.mxu0 %v3820_v19  ;;  %v1284_v19 = vpack.c.b16 %v1268_v4, %v1268_v4  ;;  %v3882_v4 = vld [vmem:[%s4539_s27 + $0x614] ss:$8 sps:$4 sm:$0xff]   ;;  %v641_v10 = vsel %vm580_vm0, %v4820_v14, 0.0 }
 0x115   : > { %2654 = vmatpush1.bf16.msra.mxu1 %v3829_v24  ;;  %2815 = vmatprep.subr.bf16.mxu0 %v3828_v27  ;;  %v4825_v24 = vunpack.c.l.bf16 %v4811_v9  ;;  %v534_v27 = vcombine.high %v4820_v14, %v4820_v14  ;;  %v3888_v14 = vld [vmem:[%s4539_s27 + $0x624] ss:$8 sps:$4 sm:$0xff]  }
 0x116   : > { %2655 = vmatprep.subr.bf16.mxu1 %v3837_v12  ;;  %v526_v12 = vcombine.high %v4817_v11, %v4817_v11 }
 0x117   : > { %v542_v33 = vcombine.high %v4825_v24, %v4825_v24  ;;  %v644_v56 = vsel %vm580_vm0, %v534_v27, 0.0  ;;  %v642_v21 = vsel %vm580_vm0, %v4825_v24, 0.0 }
 0x118   : > { %2816 = vmatpush1.bf16.msra.mxu0 %v3826_v30  ;;  %v4843_v30 = vld [vmem:[%s4531_s15 + $0x78] sm:$0xff]  ;;  %v643_v24 = vadd.f32 %v642_v21, %v641_v10  ;;  %s4179_s15 = sshll.u32 %s4279_s21, 4  ;;  %s4180_s15 = int_to_ptr.vmem [resolvable:$false] %s4179_s15 }
 0x119   : > { %2656 = vmatpush1.bf16.msra.mxu1 %v3835_v31  ;;  %2817 = vmatprep.subr.bf16.mxu0 %v3834_v53  ;;  %v4846_v31 = vunpack.c.l.bf16 %v4828_v25  ;;  %v4855_v53 = vunpack.c.l.bf16 %v4840_v29  ;;  %v645_v41 = vsel %vm580_vm0, %v542_v33, 0.0  ;;  %v3897_v33 = vld [vmem:[%s4539_s27 + $0x244] ss:$8 sps:$4 sm:$0xff]   ;;  %s4181_s28 = scalar_lea.vmem %s4180_s15, 64  ;;  %p4182_p1 = scmp.lt.s32.totalorder %s5166_s9, %s4180_s15 }
 0x11a   : > { %2657 = vmatprep.subr.bf16.mxu1 %v3843_v34  ;;  %v4852_v34 = vunpack.c.l.bf16 %v4837_v28  ;;  %v646_v44 = vadd.f32 %v645_v41, %v644_v56  ;;  %p4183_p7 = scmp.lt.s32.totalorder %s4181_s28, %s4175_s16 }
 0x11b   : > { %v522_v38 = vcombine.high %v4846_v31, %v4846_v31 }
 0x11c   : > { %2818 = vmatpush1.bf16.msra.mxu0 %v3832_v35  ;;  %v4858_v35 = vunpack.c.l.bf16 %v4843_v30  ;;  %v530_v42 = vcombine.high %v4852_v34, %v4852_v34  ;;  %p4184_p12 = por %p4183_p7, %p4182_p1 }
 0x11d   : > { %2658 = vmatpush1.bf16.msra.mxu1 %v3841_v17  ;;  %2819 = vmatprep.subr.bf16.mxu0 %v3840_v40  ;;  %v597_v17 = vsel %vm580_vm0, %v526_v12, 0.0  ;;  %v3889_v12 = vld [vmem:[%s4539_s27 + $0x230] ss:$8 sps:$4 sm:$0xff]  }
 0x11e   : > { %2659 = vmatprep.subr.bf16.mxu1 %v3849_v39  ;;  %v3868_v39 = vld [vmem:[%s4539_s27 + $0x5f0] ss:$8 sps:$4 sm:$0xff]   ;;  %v598_v40 = vadd.f32 %v597_v17, %v596_v37  ;;  %v666_v10 = vsel %vm580_vm0, %v4858_v35, 0.0  ;;  %p4185_p10 = pnand %p4184_p12, %p4178_p6 }
 0x120   : > { %2820 = vmatpush1.bf16.msra.mxu0 %v3838_v22  ;;  %v538_v22 = vcombine.high %v4855_v53, %v4855_v53 }
 0x121   : > { %2660 = vmatpush1.bf16.msra.mxu1 %v3847_v58  ;;  %2821 = vmatprep.subr.bf16.mxu0 %v3846_v46  ;;  %v3876_v58 = vld [vmem:[%s4539_s27 + $0x604] ss:$8 sps:$4 sm:$0xff]   ;;  %v620_v46 = vsel %vm580_vm0, %v522_v38, 0.0 }
 0x122   : > { %2661 = vmatprep.subr.bf16.mxu1 %v3855_v45  ;;  %v546_v45 = vcombine.high %v4858_v35, %v4858_v35  ;;  %v668_v50 = vsel %vm580_vm0, %v538_v22, 0.0 }
 0x124   : > { %2822 = vmatpush1.bf16.msra.mxu0 %v3844_v48  ;;  %v712_v48 = vsel %vm580_vm0, %v598_v40, 0.0  ;;  %v669_v55 = vsel %vm580_vm0, %v546_v45, 0.0  ;;  %v3895_v40 = vld [vmem:[%s4539_s27 + $0x240] ss:$8 sps:$4 sm:$0xff]  }
 0x125   : > { %2662 = vmatpush1.bf16.msra.mxu1 %v3853_v49  ;;  %2823 = vmatprep.subr.bf16.mxu0 %v3852_v54  ;;  %v621_v49 = vsel %vm580_vm0, %v530_v42, 0.0  ;;  %v713_v51 = vrot.slane %v712_v48, 4  ;;  %v670_v63 = vadd.f32 %v669_v55, %v668_v50 }
 0x126   : > { %2663 = vmatprep.subr.bf16.mxu1 %v3861_v52  ;;  %v824_v52 = vsel %vm580_vm0, %v646_v44, 0.0  ;;  %v622_v54 = vadd.f32 %v621_v49, %v620_v46  ;;  %v3894_v46 = vld [vmem:[%s4539_s27 + $0x634] ss:$8 sps:$4 sm:$0xff]  }
 0x128   : > { %2824 = vmatpush1.bf16.msra.mxu0 %v3850_v59  ;;  %v3883_v59 = vld [vmem:[%s4539_s27 + $0x220] ss:$8 sps:$4 sm:$0xff]  }
 0x129   : > { %2664 = vmatpush1.bf16.msra.mxu1 %v3859_v62  ;;  %2825 = vmatprep.subr.bf16.mxu0 %v3858_v0  ;;  %v825_v62 = vrot.slane %v824_v52, 4  ;;  %v714_v0 = vadd.f32 %v713_v51, %v712_v48  ;;  %v817_v48 = vsel %vm580_vm0, %v643_v24, 0.0 }
 0x12a   : > { %2665 = vmatprep.subr.bf16.mxu1 %v3867_v60  ;;  %v3891_v60 = vld [vmem:[%s4539_s27 + $0x234] ss:$8 sps:$4 sm:$0xff]  }
 0x12b   : > { %v826_v2 = vadd.f32 %v825_v62, %v824_v52  ;;  %v4909_v52 = vunpack.c.h.bf16 %v4802_v5  ;;  %v3892_v62 = vld [vmem:[%s4539_s27 + $0x630] ss:$8 sps:$4 sm:$0xff]   ;;  %v3900_v5 = vld [vmem:[%s4539_s27 + $0x644] ss:$8 sps:$4 sm:$0xff]  }
 0x12c   : > { %2826 = vmatpush1.bf16.msra.mxu0 %v3856_v1  ;;  %v768_v1 = vsel %vm580_vm0, %v622_v54, 0.0  ;;  %v3901_v54 = vld [vmem:[%s4539_s27 + $0x250] ss:$8 sps:$4 sm:$0xff]  }
 0x12d   : > { %2666 = vmatpush1.bf16.msra.mxu1 %v3865_v18  ;;  %2827 = vmatprep.subr.bf16.mxu0 %v3864_v3  ;;  %v769_v3 = vrot.slane %v768_v1, 4  ;;  %v880_v18 = vsel %vm580_vm0, %v670_v63, 0.0  ;;  %v3909_v63 = vld [vmem:[%s4539_s27 + $0x264] ss:$8 sps:$4 sm:$0xff]  }
 0x12e   : > { %2676 = vmatprep.subr.bf16.mxu1 %v3873_v23  ;;  %v594_v23 = vsel %vm580_vm0, %v4817_v11, 0.0 }
 0x12f   : > { %v770_v20 = vadd.f32 %v769_v3, %v768_v1  ;;  %v4918_v1 = vunpack.c.h.bf16 %v4808_v8  ;;  %v4926_v3 = vunpack.c.h.bf16 %v4811_v9  ;;  %v519_v8 = vcombine.high %v4909_v52, %v4909_v52  ;;  %v3915_v9 = vld [vmem:[%s4539_s27 + $0x274] ss:$8 sps:$4 sm:$0xff]  }
 0x130   : > { %2668 = vmatmul.mubr.bf16.vlgmr.msra.gmra.mrb[0].mxu1 %v1284_v19  ;;  %2828 = vmatpush1.bf16.msra.mxu0 %v3862_v15  ;;  %v715_v15 = vrot.slane %v714_v0, 2  ;;  %v827_v19 = vrot.slane %v826_v2, 2 }
 0x131   : > { %2677 = vmatpush1.bf16.msra.mxu1 %v3871_v16  ;;  %2829 = vmatprep.subr.bf16.mxu0 %v3870_v36  ;;  %v881_v16 = vrot.slane %v880_v18, 4  ;;  %v771_v37 = vrot.slane %v770_v20, 2 }
 0x132   : > { %2678 = vmatprep.subr.bf16.mxu1 %v3879_v32  ;;  %v716_v27 = vadd.f32 %v715_v15, %v714_v0  ;;  %v595_v32 = vadd.f32 %v594_v23, %v593_v13  ;;  %v828_v36 = vadd.f32 %v827_v19, %v826_v2  ;;  %v818_v0 = vrot.slane %v817_v48, 4  ;;  %v3907_v15 = vld [vmem:[%s4539_s27 + $0x260] ss:$8 sps:$4 sm:$0xff]  }
 0x133   : > { %v882_v11 = vadd.f32 %v881_v16, %v880_v18  ;;  %v618_v2 = vsel %vm580_vm0, %v4852_v34, 0.0  ;;  %v3898_v34 = vld [vmem:[%s4539_s27 + $0x640] ss:$8 sps:$4 sm:$0xff]  }
 0x134   : > { %2830 = vmatpush1.bf16.msra.mxu0 %v3868_v39  ;;  %v717_v17 = vrot.slane %v716_v27, 1  ;;  %v829_v38 = vrot.slane %v828_v36, 1  ;;  %v772_v39 = vadd.f32 %v771_v37, %v770_v20  ;;  %v705_v22 = vsel %vm580_vm0, %v595_v32, 0.0  ;;  %v3904_v32 = vld [vmem:[%s4539_s27 + $0x650] ss:$8 sps:$4 sm:$0xff]  }
 0x135   : > { %2679 = vmatpush1.bf16.msra.mxu1 %v3877_v43  ;;  %2840 = vmatprep.subr.bf16.mxu0 %v3876_v58  ;;  %v883_v56 = vrot.slane %v882_v11, 2  ;;  %v3886_v58 = vld [vmem:[%s4539_s27 + $0x620] ss:$8 sps:$4 sm:$0xff]   ;;  %v3903_v43 = vld [vmem:[%s4539_s27 + $0x254] ss:$8 sps:$4 sm:$0xff]   ;;  %v706_v51 = vrot.slane %v705_v22, 4  ;;  %v819_v20 = vadd.f32 %v818_v0, %v817_v48 }
 0x136   : > { %2680 = vmatprep.subr.bf16.mxu1 %v3885_v61  ;;  %v718_v41 = vadd.f32 %v717_v17, %v716_v27  ;;  %v830_v44 = vadd.f32 %v829_v38, %v828_v36  ;;  %v773_v45 = vrot.slane %v772_v39, 1  ;;  %v602_v36 = vsel %vm580_vm0, %v519_v8, 0.0  ;;  %v3921_v38 = vld [vmem:[%s4539_s27 + $0x284] ss:$8 sps:$4 sm:$0xff]  }
 0x137   : > { %2832 = vmatmul.mubr.bf16.vlgmr.msra.gmra.mrb[0].mxu0 %v1292_v7  ;;  %v884_v42 = vadd.f32 %v883_v56, %v882_v11  ;;  %v543_v11 = vcombine.high %v4926_v3, %v4926_v3  ;;  %v3933_v8 = vld [vmem:[%s4539_s27 + $0x2a4] ss:$8 sps:$4 sm:$0xff]  }
 0x138   : > { %2841 = vmatpush1.bf16.msra.mxu0 %v3874_v57  ;;  %v906_v47 = vpack.c.bf16 %v718_v41, %v718_v41  ;;  %v922_v49 = vpack.c.bf16 %v830_v44, %v830_v44  ;;  %v774_v50 = vadd.f32 %v773_v45, %v772_v39  ;;  %v820_v39 = vrot.slane %v819_v20, 2 }
 0x139   : > { %2681 = vmatpush1.bf16.msra.mxu1 %v3883_v59  ;;  %2842 = vmatprep.subr.bf16.mxu0 %v3882_v4  ;;  %v885_v61 = vrot.slane %v884_v42, 1  ;;  %v4913_v59 = vunpack.c.h.bf16 %v4805_v6  ;;  %v617_v6 = vsel %vm580_vm0, %v4846_v31, 0.0  ;;  %v707_v4 = vadd.f32 %v706_v51, %v705_v22 }
 0x13a   : > { %2682 = vmatprep.subr.bf16.mxu1 %v3891_v60  ;;  %v1238_v55 = vunpack.c.l.b16 %v906_v47  ;;  %v1254_v7 = vunpack.c.l.b16 %v922_v49  ;;  %v914_v60 = vpack.c.bf16 %v774_v50, %v774_v50  ;;  %v665_v31 = vsel %vm580_vm0, %v4855_v53, 0.0 }
 0x13b   : > { %v886_v57 = vadd.f32 %v885_v61, %v884_v42  ;;  %v527_v21 = vcombine.high %v4913_v59, %v4913_v59  ;;  %v619_v27 = vadd.f32 %v618_v2, %v617_v6  ;;  %v708_v35 = vrot.slane %v707_v4, 2  ;;  %v3912_v42 = vld [vmem:[%s4539_s27 + $0x664] ss:$8 sps:$4 sm:$0xff]   ;;  %v3919_v61 = vld [vmem:[%s4539_s27 + $0x280] ss:$8 sps:$4 sm:$0xff]  }
 0x13c   : > { %2843 = vmatpush1.bf16.msra.mxu0 %v3880_v26  ;;  %v1271_v18 = vsel %vm1265_vm1, %v1254_v7, %v1238_v55  ;;  %v1246_v23 = vunpack.c.l.b16 %v914_v60  ;;  %v535_v26 = vcombine.high %v4918_v1, %v4918_v1  ;;  %v667_v17 = vadd.f32 %v666_v10, %v665_v31  ;;  %v3916_v60 = vld [vmem:[%s4539_s27 + $0x670] ss:$8 sps:$4 sm:$0xff]  }
 0x13d   : > { %2683 = vmatpush1.bf16.msra.mxu1 %v3889_v12  ;;  %2844 = vmatprep.subr.bf16.mxu0 %v3888_v14  ;;  %v930_v13 = vpack.c.bf16 %v886_v57, %v886_v57  ;;  %v1287_v16 = vpack.c.b16 %v1271_v18, %v1271_v18  ;;  %v3906_v12 = vld [vmem:[%s4539_s27 + $0x654] ss:$8 sps:$4 sm:$0xff]   ;;  %v603_v37 = vsel %vm580_vm0, %v527_v21, 0.0  ;;  %v3913_v14 = vld [vmem:[%s4539_s27 + $0x270] ss:$8 sps:$4 sm:$0xff]   ;;  %v4954_v41 = vunpack.c.h.bf16 %v4828_v25 }
 0x13e   : > { %2684 = vmatprep.subr.bf16.mxu1 %v3897_v33  ;;  %v604_v56 = vadd.f32 %v603_v37, %v602_v36  ;;  %v650_v24 = vsel %vm580_vm0, %v535_v26, 0.0  ;;  %v761_v22 = vsel %vm580_vm0, %v619_v27, 0.0  ;;  %v4960_v44 = vunpack.c.h.bf16 %v4837_v28  ;;  %v3925_v2 = vld [vmem:[%s4539_s27 + $0x290] ss:$8 sps:$4 sm:$0xff]   ;;  %v3922_v27 = vld [vmem:[%s4539_s27 + $0x680] ss:$8 sps:$4 sm:$0xff]  }
 0x13f   : > { %v1262_v19 = vunpack.c.l.b16 %v930_v13  ;;  %2708 = vmatprep.mubr.bf16.mxu1 %v1287_v16  ;;  %v709_v45 = vadd.f32 %v708_v35, %v707_v4  ;;  %v4963_v47 = vunpack.c.h.bf16 %v4840_v29  ;;  %v4966_v25 = vunpack.c.h.bf16 %v4843_v30  ;;  %v3910_v29 = vld [vmem:[%s4539_s27 + $0x660] ss:$8 sps:$4 sm:$0xff]   ;;  %v3927_v30 = vld [vmem:[%s4539_s27 + $0x294] ss:$8 sps:$4 sm:$0xff]  }
 0x140   : > { %2845 = vmatpush1.bf16.msra.mxu0 %v3886_v58  ;;  %v873_v48 = vsel %vm580_vm0, %v667_v17, 0.0  ;;  %v523_v28 = vcombine.high %v4954_v41, %v4954_v41  ;;  %v531_v50 = vcombine.high %v4960_v44, %v4960_v44  ;;  %v821_v0 = vadd.f32 %v820_v39, %v819_v20  ;;  %v3930_v37 = vld [vmem:[%s4539_s27 + $0x694] ss:$8 sps:$4 sm:$0xff]  }
 0x141   : > { %2685 = vmatpush1.bf16.msra.mxu1 %v3895_v40  ;;  %2846 = vmatprep.subr.bf16.mxu0 %v3894_v46  ;;  %v1279_v53 = vsel %vm1265_vm1, %v1262_v19, %v1246_v23  ;;  %v651_v40 = vsel %vm580_vm0, %v543_v11, 0.0  ;;  %v539_v55 = vcombine.high %v4963_v47, %v4963_v47  ;;  %v547_v57 = vcombine.high %v4966_v25, %v4966_v25  ;;  %v3939_v11 = vld [vmem:[%s4539_s27 + $0x2b4] ss:$8 sps:$4 sm:$0xff]  }
 0x142   : > { %2686 = vmatprep.subr.bf16.mxu1 %v3903_v43  ;;  %v1295_v33 = vpack.c.b16 %v1279_v53, %v1279_v53  ;;  %v652_v58 = vadd.f32 %v651_v40, %v650_v24  ;;  %v726_v43 = vsel %vm580_vm0, %v604_v56, 0.0  ;;  %v626_v7 = vsel %vm580_vm0, %v523_v28, 0.0  ;;  %v3937_v40 = vld [vmem:[%s4539_s27 + $0x2b0] ss:$8 sps:$4 sm:$0xff]  }
 0x143   : > { %v727_v46 = vrot.slane %v726_v43, 4  ;;  %v627_v6 = vsel %vm580_vm0, %v531_v50, 0.0  ;;  %v674_v23 = vsel %vm580_vm0, %v539_v55, 0.0  ;;  %v675_v4 = vsel %vm580_vm0, %v547_v57, 0.0  ;;  %v3943_v55 = vld [vmem:[%s4539_s27 + $0x2c0] ss:$8 sps:$4 sm:$0xff]  }
 0x144   : > { %2847 = vmatpush1.bf16.msra.mxu0 %v3892_v62  ;;  %2872 = vmatprep.mubr.bf16.mxu0 %v1295_v33  ;;  %v838_v49 = vsel %vm580_vm0, %v652_v58, 0.0  ;;  %v3918_v62 = vld [vmem:[%s4539_s27 + $0x674] ss:$8 sps:$4 sm:$0xff]   ;;  %v628_v18 = vadd.f32 %v627_v6, %v626_v7  ;;  %v676_v31 = vadd.f32 %v675_v4, %v674_v23  ;;  %v822_v10 = vrot.slane %v821_v0, 1 }
 0x145   : > { %2687 = vmatpush1.bf16.msra.mxu1 %v3901_v54  ;;  %2848 = vmatprep.subr.bf16.mxu0 %v3900_v5  ;;  %v728_v51 = vadd.f32 %v727_v46, %v726_v43  ;;  %v839_v54 = vrot.slane %v838_v49, 4  ;;  %v874_v5 = vrot.slane %v873_v48, 4  ;;  %v599_v36 = vsel %vm580_vm0, %v4909_v52, 0.0  ;;  %v3928_v43 = vld [vmem:[%s4539_s27 + $0x690] ss:$8 sps:$4 sm:$0xff]  }
 0x146   : > { %2688 = vmatprep.subr.bf16.mxu1 %v3909_v63  ;;  %v762_v63 = vrot.slane %v761_v22, 4  ;;  %v782_v20 = vsel %vm580_vm0, %v628_v18, 0.0  ;;  %v894_v53 = vsel %vm580_vm0, %v676_v31, 0.0  ;;  %v5000_v56 = vadd.f32 %v822_v10, %v821_v0  ;;  %v3942_v6 = vld [vmem:[%s4539_s27 + $0x6b4] ss:$8 sps:$4 sm:$0xff]  }
 0x147   : > { %v840_v13 = vadd.f32 %v839_v54, %v838_v49  ;;  %v729_v16 = vrot.slane %v728_v51, 2  ;;  %v875_v21 = vadd.f32 %v874_v5, %v873_v48  ;;  %v783_v26 = vrot.slane %v782_v20, 4  ;;  %v3936_v49 = vld [vmem:[%s4539_s27 + $0x6a4] ss:$8 sps:$4 sm:$0xff]  }
 0x148   : > { %2849 = vmatpush1.bf16.msra.mxu0 %v3898_v34  ;;  %v3924_v34 = vld [vmem:[%s4539_s27 + $0x684] ss:$8 sps:$4 sm:$0xff]   ;;  %v895_v17 = vrot.slane %v894_v53, 4  ;;  %v600_v39 = vsel %vm580_vm0, %v4913_v59, 0.0  ;;  %v647_v52 = vsel %vm580_vm0, %v4918_v1, 0.0  ;;  %v648_v58 = vsel %vm580_vm0, %v4926_v3, 0.0 }
 0x149   : > { %2689 = vmatpush1.bf16.msra.mxu1 %v3907_v15  ;;  %2850 = vmatprep.subr.bf16.mxu0 %v3906_v12  ;;  %v710_v15 = vrot.slane %v709_v45, 1  ;;  %v841_v19 = vrot.slane %v840_v13, 2  ;;  %v3931_v12 = vld [vmem:[%s4539_s27 + $0x2a0] ss:$8 sps:$4 sm:$0xff]   ;;  %v730_v33 = vadd.f32 %v729_v16, %v728_v51  ;;  %v876_v24 = vrot.slane %v875_v21, 2 }
 0x14a   : > { %2690 = vmatprep.subr.bf16.mxu1 %v3915_v9  ;;  %v763_v9 = vadd.f32 %v762_v63, %v761_v22  ;;  %v601_v22 = vadd.f32 %v600_v39, %v599_v36  ;;  %v649_v48 = vadd.f32 %v648_v58, %v647_v52  ;;  %v623_v3 = vsel %vm580_vm0, %v4954_v41, 0.0  ;;  %v3951_v41 = vld [vmem:[%s4539_s27 + $0x2d4] ss:$8 sps:$4 sm:$0xff]   ;;  %v3957_v10 = vld [vmem:[%s4539_s27 + $0x2e4] ss:$8 sps:$4 sm:$0xff]  }
 0x14b   : > { %v842_v35 = vadd.f32 %v841_v19, %v840_v13  ;;  %v731_v59 = vrot.slane %v730_v33, 1  ;;  %v624_v50 = vsel %vm580_vm0, %v4960_v44, 0.0  ;;  %v877_v57 = vadd.f32 %v876_v24, %v875_v21  ;;  %v3949_v19 = vld [vmem:[%s4539_s27 + $0x2d0] ss:$8 sps:$4 sm:$0xff]  }
 0x14c   : > { %2851 = vmatpush1.bf16.msra.mxu0 %v3904_v32  ;;  %v4995_v32 = vadd.f32 %v710_v15, %v709_v45  ;;  %v3945_v45 = vld [vmem:[%s4539_s27 + $0x2c4] ss:$8 sps:$4 sm:$0xff]   ;;  %v719_v1 = vsel %vm580_vm0, %v601_v22, 0.0  ;;  %v831_v54 = vsel %vm580_vm0, %v649_v48, 0.0  ;;  %v625_v63 = vadd.f32 %v624_v50, %v623_v3  ;;  %v3963_v22 = vld [vmem:[%s4539_s27 + $0x2f4] ss:$8 sps:$4 sm:$0xff]  }
 0x14d   : > { %2691 = vmatpush1.bf16.msra.mxu1 %v3913_v14  ;;  %2852 = vmatprep.subr.bf16.mxu0 %v3912_v42  ;;  %v764_v14 = vrot.slane %v763_v9, 2  ;;  %v896_v42 = vadd.f32 %v895_v17, %v894_v53  ;;  %v720_v51 = vrot.slane %v719_v1, 4  ;;  %v671_v7 = vsel %vm580_vm0, %v4963_v47, 0.0  ;;  %v3961_v3 = vld [vmem:[%s4539_s27 + $0x2f0] ss:$8 sps:$4 sm:$0xff]  }
 0x14e   : > { %2692 = vmatprep.subr.bf16.mxu1 %v3921_v38  ;;  %v784_v38 = vadd.f32 %v783_v26, %v782_v20  ;;  %v905_v46 = vpack.c.bf16 %v4995_v32, %v4995_v32  ;;  %v732_v44 = vadd.f32 %v731_v59, %v730_v33  ;;  %v672_v13 = vsel %vm580_vm0, %v4966_v25, 0.0  ;;  %v3940_v20 = vld [vmem:[%s4539_s27 + $0x6b0] ss:$8 sps:$4 sm:$0xff]  }
 0x14f   : > { %v765_v28 = vadd.f32 %v764_v14, %v763_v9  ;;  %v721_v5 = vadd.f32 %v720_v51, %v719_v1  ;;  %v673_v23 = vadd.f32 %v672_v13, %v671_v7  ;;  %v775_v16 = vsel %vm580_vm0, %v625_v63, 0.0 }
 0x150   : > { %2853 = vmatpush1.bf16.msra.mxu0 %v3910_v29  ;;  %v785_v29 = vrot.slane %v784_v38, 2  ;;  %v878_v31 = vrot.slane %v877_v57, 1  ;;  %v908_v21 = vpack.c.bf16 %v732_v44, %v732_v44 }
 0x151   : > { %2693 = vmatpush1.bf16.msra.mxu1 %v3919_v61  ;;  %2854 = vmatprep.subr.bf16.mxu0 %v3918_v62  ;;  %v843_v61 = vrot.slane %v842_v35, 1  ;;  %v832_v62 = vrot.slane %v831_v54, 4  ;;  %v766_v18 = vrot.slane %v765_v28, 1  ;;  %v722_v15 = vrot.slane %v721_v5, 2 }
 0x152   : > { %2694 = vmatprep.subr.bf16.mxu1 %v3927_v30  ;;  %v897_v30 = vrot.slane %v896_v42, 2  ;;  %v786_v4 = vadd.f32 %v785_v29, %v784_v38  ;;  %v887_v9 = vsel %vm580_vm0, %v673_v23, 0.0  ;;  %v879_v38 = vadd.f32 %v878_v31, %v877_v57  ;;  %v3966_v31 = vld [vmem:[%s4539_s27 + $0x6f4] ss:$8 sps:$4 sm:$0xff]  }
 0x153   : > { %v844_v0 = vadd.f32 %v843_v61, %v842_v35  ;;  %v833_v47 = vadd.f32 %v832_v62, %v831_v54  ;;  %v888_v53 = vrot.slane %v887_v9, 4  ;;  %v767_v24 = vadd.f32 %v766_v18, %v765_v28  ;;  %v3952_v54 = vld [vmem:[%s4539_s27 + $0x6d0] ss:$8 sps:$4 sm:$0xff]  }
 0x154   : > { %2855 = vmatpush1.bf16.msra.mxu0 %v3916_v60  ;;  %v3934_v60 = vld [vmem:[%s4539_s27 + $0x6a0] ss:$8 sps:$4 sm:$0xff]   ;;  %v787_v36 = vrot.slane %v786_v4, 1  ;;  %v1240_v52 = vunpack.c.l.b16 %v908_v21  ;;  %v929_v57 = vpack.c.bf16 %v879_v38, %v879_v38  ;;  %v3964_v21 = vld [vmem:[%s4539_s27 + $0x6f0] ss:$8 sps:$4 sm:$0xff]  }
 0x155   : > { %2695 = vmatpush1.bf16.msra.mxu1 %v3925_v2  ;;  %2856 = vmatprep.subr.bf16.mxu0 %v3924_v34  ;;  %v921_v2 = vpack.c.bf16 %v5000_v56, %v5000_v56  ;;  %v834_v25 = vrot.slane %v833_v47, 2  ;;  %v776_v34 = vrot.slane %v775_v16, 4  ;;  %v924_v26 = vpack.c.bf16 %v844_v0, %v844_v0  ;;  %v3955_v56 = vld [vmem:[%s4539_s27 + $0x2e0] ss:$8 sps:$4 sm:$0xff]   ;;  %v3984_v38 = vld [vmem:[%s4539_s27 + $0x724] ss:$8 sps:$4 sm:$0xff]  }
 0x156   : > { %2696 = vmatprep.subr.bf16.mxu1 %v3933_v8  ;;  %v898_v8 = vadd.f32 %v897_v30, %v896_v42  ;;  %v889_v17 = vadd.f32 %v888_v53, %v887_v9  ;;  %v3946_v42 = vld [vmem:[%s4539_s27 + $0x6c0] ss:$8 sps:$4 sm:$0xff]   ;;  %v788_v48 = vadd.f32 %v787_v36, %v786_v4  ;;  %v913_v29 = vpack.c.bf16 %v767_v24, %v767_v24  ;;  %v3987_v36 = vld [vmem:[%s4539_s27 + $0x334] ss:$8 sps:$4 sm:$0xff]   ;;  %v3993_v24 = vld [vmem:[%s4539_s27 + $0x344] ss:$8 sps:$4 sm:$0xff]  }
 0x157   : > { %v1253_v32 = vunpack.c.l.b16 %v921_v2  ;;  %v835_v33 = vadd.f32 %v834_v25, %v833_v47  ;;  %v777_v35 = vadd.f32 %v776_v34, %v775_v16  ;;  %v1256_v58 = vunpack.c.l.b16 %v924_v26  ;;  %v3967_v2 = vld [vmem:[%s4539_s27 + $0x300] ss:$8 sps:$4 sm:$0xff]   ;;  %v3975_v16 = vld [vmem:[%s4539_s27 + $0x314] ss:$8 sps:$4 sm:$0xff]  }
 0x158   : > { %2857 = vmatpush1.bf16.msra.mxu0 %v3922_v27  ;;  %v3948_v27 = vld [vmem:[%s4539_s27 + $0x6c4] ss:$8 sps:$4 sm:$0xff]   ;;  %v3958_v4 = vld [vmem:[%s4539_s27 + $0x6e0] ss:$8 sps:$4 sm:$0xff]  }
 0x159   : > { %2697 = vmatpush1.bf16.msra.mxu1 %v3931_v12  ;;  %2858 = vmatprep.subr.bf16.mxu0 %v3930_v37  ;;  %v723_v12 = vadd.f32 %v722_v15, %v721_v5  ;;  %v899_v37 = vrot.slane %v898_v8, 1  ;;  %v836_v39 = vrot.slane %v835_v33, 1  ;;  %v1273_v62 = vsel %vm1265_vm1, %v1256_v58, %v1240_v52  ;;  %v3997_v52 = vld [vmem:[%s4539_s27 + $0x350] ss:$8 sps:$4 sm:$0xff]  }
 0x15a   : > { %2698 = vmatprep.subr.bf16.mxu1 %v3939_v11  ;;  %v1237_v11 = vunpack.c.l.b16 %v905_v46  ;;  %v3954_v46 = vld [vmem:[%s4539_s27 + $0x6d4] ss:$8 sps:$4 sm:$0xff]   ;;  %v916_v5 = vpack.c.bf16 %v788_v48, %v788_v48  ;;  %v1289_v18 = vpack.c.b16 %v1273_v62, %v1273_v62  ;;  %v1261_v15 = vunpack.c.l.b16 %v929_v57  ;;  %v3988_v58 = vld [vmem:[%s4539_s27 + $0x730] ss:$8 sps:$4 sm:$0xff]   ;;  %v4029_v57 = vld [vmem:[%s4539_s27 + $0x3a4] ss:$8 sps:$4 sm:$0xff]  }
 0x15b   : > { %v724_v14 = vrot.slane %v723_v12, 1  ;;  %v837_v59 = vadd.f32 %v836_v39, %v835_v33  ;;  %v3979_v33 = vld [vmem:[%s4539_s27 + $0x320] ss:$8 sps:$4 sm:$0xff]   ;;  %v4002_v48 = vld [vmem:[%s4539_s27 + $0x754] ss:$8 sps:$4 sm:$0xff]  }
 0x15c   : > { %2859 = vmatpush1.bf16.msra.mxu0 %v3928_v43  ;;  %v1270_v50 = vsel %vm1265_vm1, %v1253_v32, %v1237_v11  ;;  %v1248_v34 = vunpack.c.l.b16 %v916_v5  ;;  %v3991_v39 = vld [vmem:[%s4539_s27 + $0x340] ss:$8 sps:$4 sm:$0xff]   ;;  %v4020_v62 = vld [vmem:[%s4539_s27 + $0x784] ss:$8 sps:$4 sm:$0xff]  }
 0x15d   : > { %2699 = vmatpush1.bf16.msra.mxu1 %v3937_v40  ;;  %2860 = vmatprep.subr.bf16.mxu0 %v3936_v49  ;;  %v778_v40 = vrot.slane %v777_v35, 2  ;;  %v725_v43 = vadd.f32 %v724_v14, %v723_v12  ;;  %v900_v49 = vadd.f32 %v899_v37, %v898_v8  ;;  %v923_v30 = vpack.c.bf16 %v837_v59, %v837_v59  ;;  %v3981_v12 = vld [vmem:[%s4539_s27 + $0x324] ss:$8 sps:$4 sm:$0xff]   ;;  %v3978_v37 = vld [vmem:[%s4539_s27 + $0x714] ss:$8 sps:$4 sm:$0xff]  }
 0x15e   : > { %2700 = vmatprep.subr.bf16.mxu1 %v3945_v45  ;;  %v890_v45 = vrot.slane %v889_v17, 2  ;;  %v1286_v0 = vpack.c.b16 %v1270_v50, %v1270_v50  ;;  %v1245_v8 = vunpack.c.l.b16 %v913_v29  ;;  %v3994_v59 = vld [vmem:[%s4539_s27 + $0x740] ss:$8 sps:$4 sm:$0xff]   ;;  %v4041_v5 = vld [vmem:[%s4539_s27 + $0x3c4] ss:$8 sps:$4 sm:$0xff]  }
 0x15f   : > { %v779_v61 = vadd.f32 %v778_v40, %v777_v35  ;;  %v907_v28 = vpack.c.bf16 %v725_v43, %v725_v43  ;;  %v932_v13 = vpack.c.bf16 %v900_v49, %v900_v49  ;;  %v3970_v35 = vld [vmem:[%s4539_s27 + $0x700] ss:$8 sps:$4 sm:$0xff]   ;;  %v4005_v43 = vld [vmem:[%s4539_s27 + $0x364] ss:$8 sps:$4 sm:$0xff]   ;;  %v4009_v49 = vld [vmem:[%s4539_s27 + $0x370] ss:$8 sps:$4 sm:$0xff]  }
 0x160   : > { %2861 = vmatpush1.bf16.msra.mxu0 %v3934_v60  ;;  %v891_v1 = vadd.f32 %v890_v45, %v889_v17  ;;  %v3960_v60 = vld [vmem:[%s4539_s27 + $0x6e4] ss:$8 sps:$4 sm:$0xff]   ;;  %v1278_v26 = vsel %vm1265_vm1, %v1261_v15, %v1245_v8  ;;  %v3985_v17 = vld [vmem:[%s4539_s27 + $0x330] ss:$8 sps:$4 sm:$0xff]   ;;  %v3982_v40 = vld [vmem:[%s4539_s27 + $0x720] ss:$8 sps:$4 sm:$0xff]  }
 0x161   : > { %2701 = vmatpush1.bf16.msra.mxu1 %v3943_v55  ;;  %2862 = vmatprep.subr.bf16.mxu0 %v3942_v6  ;;  %v780_v51 = vrot.slane %v779_v61, 1  ;;  %v3969_v55 = vld [vmem:[%s4539_s27 + $0x304] ss:$8 sps:$4 sm:$0xff]   ;;  %v1239_v63 = vunpack.c.l.b16 %v907_v28  ;;  %v1264_v9 = vunpack.c.l.b16 %v932_v13  ;;  %v1294_v32 = vpack.c.b16 %v1278_v26, %v1278_v26  ;;  %v4000_v28 = vld [vmem:[%s4539_s27 + $0x750] ss:$8 sps:$4 sm:$0xff]  }
 0x162   : > { %2702 = vmatprep.subr.bf16.mxu1 %v3951_v41  ;;  %v892_v7 = vrot.slane %v891_v1, 1  ;;  %v1255_v41 = vunpack.c.l.b16 %v923_v30  ;;  %v3996_v45 = vld [vmem:[%s4539_s27 + $0x744] ss:$8 sps:$4 sm:$0xff]   ;;  %v4015_v50 = vld [vmem:[%s4539_s27 + $0x380] ss:$8 sps:$4 sm:$0xff]  }
 0x163   : > { %v781_v44 = vadd.f32 %v780_v51, %v779_v61  ;;  %v1281_v11 = vsel %vm1265_vm1, %v1264_v9, %v1248_v34  ;;  %v4011_v61 = vld [vmem:[%s4539_s27 + $0x374] ss:$8 sps:$4 sm:$0xff]   ;;  %v4006_v29 = vld [vmem:[%s4539_s27 + $0x760] ss:$8 sps:$4 sm:$0xff]   ;;  %v4032_v13 = vld [vmem:[%s4539_s27 + $0x7a4] ss:$8 sps:$4 sm:$0xff]  }
 0x164   : > { %2863 = vmatpush1.bf16.msra.mxu0 %v3940_v20  ;;  %v893_v6 = vadd.f32 %v892_v7, %v891_v1  ;;  %v5048_v47 = vsel %vm1265_vm1, %v1255_v41, %v1239_v63  ;;  %v1297_v14 = vpack.c.b16 %v1281_v11, %v1281_v11  ;;  %v4017_v1 = vld [vmem:[%s4539_s27 + $0x384] ss:$8 sps:$4 sm:$0xff]   ;;  %v4023_v30 = vld [vmem:[%s4539_s27 + $0x394] ss:$8 sps:$4 sm:$0xff]   ;;  %v4027_v63 = vld [vmem:[%s4539_s27 + $0x3a0] ss:$8 sps:$4 sm:$0xff]  }
 0x165   : > { %2703 = vmatpush1.bf16.msra.mxu1 %v3949_v19  ;;  %2864 = vmatprep.subr.bf16.mxu0 %v3948_v27  ;;  %v915_v23 = vpack.c.bf16 %v781_v44, %v781_v44  ;;  %v3972_v27 = vld [vmem:[%s4539_s27 + $0x704] ss:$8 sps:$4 sm:$0xff]   ;;  %v4014_v51 = vld [vmem:[%s4539_s27 + $0x774] ss:$8 sps:$4 sm:$0xff]   ;;  %v4018_v7 = vld [vmem:[%s4539_s27 + $0x780] ss:$8 sps:$4 sm:$0xff]  }
 0x166   : > { %2704 = vmatprep.subr.bf16.mxu1 %v3957_v10  ;;  %v931_v19 = vpack.c.bf16 %v893_v6, %v893_v6  ;;  %v3973_v10 = vld [vmem:[%s4539_s27 + $0x310] ss:$8 sps:$4 sm:$0xff]   ;;  %v4026_v41 = vld [vmem:[%s4539_s27 + $0x794] ss:$8 sps:$4 sm:$0xff]   ;;  %v4039_v6 = vld [vmem:[%s4539_s27 + $0x3c0] ss:$8 sps:$4 sm:$0xff]  }
 0x167   : > { %v1247_v25 = vunpack.c.l.b16 %v915_v23  ;;  %v4033_v44 = vld [vmem:[%s4539_s27 + $0x3b0] ss:$8 sps:$4 sm:$0xff]   ;;  %v4038_v23 = vld [vmem:[%s4539_s27 + $0x7b4] ss:$8 sps:$4 sm:$0xff]   ;;  %v4053_v15 = vld [vmem:[%s4539_s27 + $0x3e4] ss:$8 sps:$4 sm:$0xff]  }
 0x168   : > { %2865 = vmatpush1.bf16.msra.mxu0 %v3946_v42  ;;  %v1263_v20 = vunpack.c.l.b16 %v931_v19  ;;  %v3999_v42 = vld [vmem:[%s4539_s27 + $0x354] ss:$8 sps:$4 sm:$0xff]   ;;  %v4036_v8 = vld [vmem:[%s4539_s27 + $0x7b0] ss:$8 sps:$4 sm:$0xff]   ;;  %v4051_v19 = vld [vmem:[%s4539_s27 + $0x3e0] ss:$8 sps:$4 sm:$0xff]  }
 0x169   : > { %2705 = vmatpush1.bf16.msra.mxu1 %v3955_v56  ;;  %2866 = vmatprep.subr.bf16.mxu0 %v3954_v46  ;;  %v3976_v56 = vld [vmem:[%s4539_s27 + $0x710] ss:$8 sps:$4 sm:$0xff]   ;;  %v4003_v46 = vld [vmem:[%s4539_s27 + $0x360] ss:$8 sps:$4 sm:$0xff]   ;;  %v4050_v34 = vld [vmem:[%s4539_s27 + $0x7d4] ss:$8 sps:$4 sm:$0xff]  }
 0x16a   : > { %2706 = vmatprep.subr.bf16.mxu1 %v3963_v22  ;;  %v5058_v53 = vsel %vm1265_vm1, %v1263_v20, %v1247_v25  ;;  %v3990_v22 = vld [vmem:[%s4539_s27 + $0x734] ss:$8 sps:$4 sm:$0xff]   ;;  %v2938_v9 = vld [vmem:[%s4551_s24 + $0x80] sm:$0xff]  ;;  %v2939_v20 = vld [vmem:[%s4551_s24 + $0x88] sm:$0xff] }
 0x16b   : > { %v4059_v25 = vld [vmem:[%s4539_s27 + $0x3f4] ss:$8 sps:$4 sm:$0xff]   ;;  %v3539_v26 = vpack.c.bf16 %v2939_v20, %v2938_v9  ;;  %v4056_v11 = vld [vmem:[%s4539_s27 + $0x7e4] ss:$8 sps:$4 sm:$0xff]  }
 0x16c   : > { %2867 = vmatpush1.bf16.msra.mxu0 %v3952_v54  ;;  %v4021_v54 = vld [vmem:[%s4539_s27 + $0x390] ss:$8 sps:$4 sm:$0xff]  }
 0x16d   : > { %2707 = vmatpush1.bf16.msra.mxu1 %v3961_v3  ;;  %2868 = vmatprep.subr.bf16.mxu0 %v3960_v60  ;;  %v4008_v3 = vld [vmem:[%s4539_s27 + $0x764] ss:$8 sps:$4 sm:$0xff]   ;;  %v4035_v60 = vld [vmem:[%s4539_s27 + $0x3b4] ss:$8 sps:$4 sm:$0xff]  }
 0x16e   : > { %2717 = vmatprep.subr.bf16.mxu1 %v3969_v55  ;;  %v4012_v55 = vld [vmem:[%s4539_s27 + $0x770] ss:$8 sps:$4 sm:$0xff]  }
 0x170   : > { %2709 = vmatmul.mubr.bf16.vlgmr.msra.gmra.mrb[0].mxu1 %v1286_v0  ;;  %2869 = vmatpush1.bf16.msra.mxu0 %v3958_v4  ;;  %v4024_v0 = vld [vmem:[%s4539_s27 + $0x790] ss:$8 sps:$4 sm:$0xff]  }
 0x171   : > { %2718 = vmatpush1.bf16.msra.mxu1 %v3967_v2  ;;  %2749 = vmatprep.mubr.bf16.mxu1 %v1289_v18  ;;  %v4030_v2 = vld [vmem:[%s4539_s27 + $0x7a0] ss:$8 sps:$4 sm:$0xff]   ;;  %v4047_v18 = vld [vmem:[%s4539_s27 + $0x3d4] ss:$8 sps:$4 sm:$0xff]   ;;  %v4045_v4 = vld [vmem:[%s4539_s27 + $0x3d0] ss:$8 sps:$4 sm:$0xff]  }
 0x172   : > { %2719 = vmatprep.subr.bf16.mxu1 %v3975_v16  ;;  %2870 = vmatprep.subr.bf16.mxu0 %v3966_v31  ;;  %v4044_v16 = vld [vmem:[%s4539_s27 + $0x7c4] ss:$8 sps:$4 sm:$0xff]   ;;  %v4042_v31 = vld [vmem:[%s4539_s27 + $0x7c0] ss:$8 sps:$4 sm:$0xff]  }
 0x174   : > { %2871 = vmatpush1.bf16.msra.mxu0 %v3964_v21  ;;  %v4048_v21 = vld [vmem:[%s4539_s27 + $0x7d0] ss:$8 sps:$4 sm:$0xff]  }
 0x175   : > { %2720 = vmatpush1.bf16.msra.mxu1 %v3973_v10  ;;  %2881 = vmatprep.subr.bf16.mxu0 %v3972_v27  ;;  %v4057_v10 = vld [vmem:[%s4539_s27 + $0x3f0] ss:$8 sps:$4 sm:$0xff]  }
 0x176   : > { %2721 = vmatprep.subr.bf16.mxu1 %v3981_v12  ;;  %v2922_v12 = vld [vmem:[%s4551_s24] sm:$0xff]  ;;  %v2923_v27 = vld [vmem:[%s4551_s24 + $0x8] sm:$0xff] }
 0x177   : > { %2873 = vmatmul.mubr.bf16.vlgmr.msra.gmra.mrb[0].mxu0 %v1294_v32  ;;  %v2940_v32 = vld [vmem:[%s4551_s24 + $0x90] sm:$0xff] }
 0x178   : > { %2882 = vmatpush1.bf16.msra.mxu0 %v3970_v35  ;;  %2913 = vmatprep.mubr.bf16.mxu0 %v1297_v14  ;;  %v1288_v35 = vpack.c.b16 %v5048_v47, %v5048_v47 }
 0x179   : > { %2722 = vmatpush1.bf16.msra.mxu1 %v3979_v33  ;;  %2883 = vmatprep.subr.bf16.mxu0 %v3978_v37  ;;  %v2941_v33 = vld [vmem:[%s4551_s24 + $0x98] sm:$0xff] }
 0x17a   : > { %2723 = vmatprep.subr.bf16.mxu1 %v3987_v36  ;;  %v3541_v36 = vpack.c.bf16 %v2923_v27, %v2922_v12  ;;  %v4054_v37 = vld [vmem:[%s4539_s27 + $0x7e0] ss:$8 sps:$4 sm:$0xff]   ;;  %v3543_v14 = vpack.c.bf16 %v2941_v33, %v2940_v32 }
 0x17c   : > { %2884 = vmatpush1.bf16.msra.mxu0 %v3976_v56  ;;  %v2925_v56 = vld [vmem:[%s4551_s24 + $0x18] sm:$0xff] }
 0x17d   : > { %2724 = vmatpush1.bf16.msra.mxu1 %v3985_v17  ;;  %2885 = vmatprep.subr.bf16.mxu0 %v3984_v38  ;;  %v2924_v17 = vld [vmem:[%s4551_s24 + $0x10] sm:$0xff]  ;;  %v2942_v38 = vld [vmem:[%s4551_s24 + $0xa0] sm:$0xff] }
 0x17e   : > { %2725 = vmatprep.subr.bf16.mxu1 %v3993_v24  ;;  %v4062_v24 = vld [vmem:[%s4539_s27 + $0x7f4] ss:$8 sps:$4 sm:$0xff]   ;;  %v3545_v47 = vpack.c.bf16 %v2925_v56, %v2924_v17 }
 0x180   : > { %2886 = vmatpush1.bf16.msra.mxu0 %v3982_v40  ;;  %v4060_v40 = vld [vmem:[%s4539_s27 + $0x7f0] ss:$8 sps:$4 sm:$0xff]  }
 0x181   : > { %2726 = vmatpush1.bf16.msra.mxu1 %v3991_v39  ;;  %2887 = vmatprep.subr.bf16.mxu0 %v3990_v22  ;;  %v2943_v39 = vld [vmem:[%s4551_s24 + $0xa8] sm:$0xff]  ;;  %v2926_v22 = vld [vmem:[%s4551_s24 + $0x20] sm:$0xff] }
 0x182   : > { %2727 = vmatprep.subr.bf16.mxu1 %v3999_v42  ;;  %v3547_v42 = vpack.c.bf16 %v2943_v39, %v2942_v38 }
 0x184   : > { %2888 = vmatpush1.bf16.msra.mxu0 %v3988_v58  ;;  %v2944_v58 = vld [vmem:[%s4551_s24 + $0xb0] sm:$0xff] }
 0x185   : > { %2728 = vmatpush1.bf16.msra.mxu1 %v3997_v52  ;;  %2889 = vmatprep.subr.bf16.mxu0 %v3996_v45  ;;  %v2927_v52 = vld [vmem:[%s4551_s24 + $0x28] sm:$0xff]  ;;  %v1296_v45 = vpack.c.b16 %v5058_v53, %v5058_v53 }
 0x186   : > { %2729 = vmatprep.subr.bf16.mxu1 %v4005_v43  ;;  %v2945_v43 = vld [vmem:[%s4551_s24 + $0xb8] sm:$0xff] }
 0x188   : > { %2890 = vmatpush1.bf16.msra.mxu0 %v3994_v59  ;;  %v3551_v59 = vpack.c.bf16 %v2945_v43, %v2944_v58 }
 0x189   : > { %2730 = vmatpush1.bf16.msra.mxu1 %v4003_v46  ;;  %2891 = vmatprep.subr.bf16.mxu0 %v4002_v48  ;;  %v3549_v46 = vpack.c.bf16 %v2927_v52, %v2926_v22  ;;  %v2929_v48 = vld [vmem:[%s4551_s24 + $0x38] sm:$0xff] }
 0x18a   : > { %2731 = vmatprep.subr.bf16.mxu1 %v4011_v61  ;;  %v2928_v61 = vld [vmem:[%s4551_s24 + $0x30] sm:$0xff] }
 0x18c   : > { %2892 = vmatpush1.bf16.msra.mxu0 %v4000_v28  ;;  %v2947_v28 = vld [vmem:[%s4551_s24 + $0xc8] sm:$0xff] }
 0x18d   : > { %2732 = vmatpush1.bf16.msra.mxu1 %v4009_v49  ;;  %2893 = vmatprep.subr.bf16.mxu0 %v4008_v3  ;;  %v2946_v49 = vld [vmem:[%s4551_s24 + $0xc0] sm:$0xff] }
 0x18e   : > { %2733 = vmatprep.subr.bf16.mxu1 %v4017_v1  ;;  %v3553_v1 = vpack.c.bf16 %v2929_v48, %v2928_v61  ;;  %v3555_v53 = vpack.c.bf16 %v2947_v28, %v2946_v49  ;;  %v2930_v3 = vld [vmem:[%s4551_s24 + $0x40] sm:$0xff] }
 0x190   : > { %2894 = vmatpush1.bf16.msra.mxu0 %v4006_v29  ;;  %v2948_v29 = vld [vmem:[%s4551_s24 + $0xd0] sm:$0xff] }
 0x191   : > { %2734 = vmatpush1.bf16.msra.mxu1 %v4015_v50  ;;  %2895 = vmatprep.subr.bf16.mxu0 %v4014_v51  ;;  %v2931_v50 = vld [vmem:[%s4551_s24 + $0x48] sm:$0xff] }
 0x192   : > { %2735 = vmatprep.subr.bf16.mxu1 %v4023_v30  ;;  %v2949_v30 = vld [vmem:[%s4551_s24 + $0xd8] sm:$0xff]  ;;  %v3557_v51 = vpack.c.bf16 %v2931_v50, %v2930_v3 }
 0x194   : > { %2896 = vmatpush1.bf16.msra.mxu0 %v4012_v55  ;;  %v2932_v55 = vld [vmem:[%s4551_s24 + $0x50] sm:$0xff] }
 0x195   : > { %2736 = vmatpush1.bf16.msra.mxu1 %v4021_v54  ;;  %2897 = vmatprep.subr.bf16.mxu0 %v4020_v62  ;;  %v3559_v54 = vpack.c.bf16 %v2949_v30, %v2948_v29  ;;  %v2950_v62 = vld [vmem:[%s4551_s24 + $0xe0] sm:$0xff] }
 0x196   : > { %2737 = vmatprep.subr.bf16.mxu1 %v4029_v57  ;;  %v2933_v57 = vld [vmem:[%s4551_s24 + $0x58] sm:$0xff] }
 0x198   : > { %2898 = vmatpush1.bf16.msra.mxu0 %v4018_v7  ;;  %v3561_v7 = vpack.c.bf16 %v2933_v57, %v2932_v55 }
 0x199   : > { %2738 = vmatpush1.bf16.msra.mxu1 %v4027_v63  ;;  %2899 = vmatprep.subr.bf16.mxu0 %v4026_v41  ;;  %v2951_v63 = vld [vmem:[%s4551_s24 + $0xe8] sm:$0xff]  ;;  %v2934_v41 = vld [vmem:[%s4551_s24 + $0x60] sm:$0xff] }
 0x19a   : > { %2739 = vmatprep.subr.bf16.mxu1 %v4035_v60  ;;  %v3563_v60 = vpack.c.bf16 %v2951_v63, %v2950_v62 }
 0x19c   : > { %2900 = vmatpush1.bf16.msra.mxu0 %v4024_v0 }
 0x19d   : > { %2740 = vmatpush1.bf16.msra.mxu1 %v4033_v44  ;;  %2901 = vmatprep.subr.bf16.mxu0 %v4032_v13  ;;  %v2935_v44 = vld [vmem:[%s4551_s24 + $0x68] sm:$0xff]  ;;  %v2953_v13 = vld [vmem:[%s4551_s24 + $0xf8] sm:$0xff] }
 0x19e   : > { %2741 = vmatprep.subr.bf16.mxu1 %v4041_v5  ;;  %v3565_v0 = vpack.c.bf16 %v2935_v44, %v2934_v41  ;;  %v2952_v5 = vld [vmem:[%s4551_s24 + $0xf0] sm:$0xff] }
 0x1a0   : > { %2902 = vmatpush1.bf16.msra.mxu0 %v4030_v2  ;;  %v2936_v2 = vld [vmem:[%s4551_s24 + $0x70] sm:$0xff] }
 0x1a1   : > { %2742 = vmatpush1.bf16.msra.mxu1 %v4039_v6  ;;  %2903 = vmatprep.subr.bf16.mxu0 %v4038_v23  ;;  %v3567_v6 = vpack.c.bf16 %v2953_v13, %v2952_v5 }
 0x1a2   : > { %2743 = vmatprep.subr.bf16.mxu1 %v4047_v18  ;;  %v2937_v18 = vld [vmem:[%s4551_s24 + $0x78] sm:$0xff] }
 0x1a3   : > { %v3569_v23 = vpack.c.bf16 %v2937_v18, %v2936_v2 }
 0x1a4   : > { %2904 = vmatpush1.bf16.msra.mxu0 %v4036_v8 }
 0x1a5   : > { %2744 = vmatpush1.bf16.msra.mxu1 %v4045_v4  ;;  %2905 = vmatprep.subr.bf16.mxu0 %v4044_v16  ;;  %v1191_v4 = vlaneseq  ;;  %v1189_v16 = vld [vmem:[%s4549_s29] sm:$0x3] }
 0x1a6   : > { %2745 = vmatprep.subr.bf16.mxu1 %v4053_v15 }
 0x1a7   : > { %v1192_v8 = vshrl.u32 %v1191_v4, 7 }
 0x1a8   : > { %2906 = vmatpush1.bf16.msra.mxu0 %v4042_v31 }
 0x1a9   : > { %2746 = vmatpush1.bf16.msra.mxu1 %v4051_v19  ;;  %2907 = vmatprep.subr.bf16.mxu0 %v4050_v34  ;;  %v1193_v15 = vsub.s32 0, %v1192_v8  ;;  %v1197_v19 = vsub.s32 1, %v1192_v8 }
 0x1aa   : > { %2747 = vmatprep.subr.bf16.mxu1 %v4059_v25 }
 0x1ab   : > { %v1194_v34 = vrot.slane %v1189_v16, %v1193_v15  ;;  %v1198_v20 = vrot.slane %v1189_v16, %v1197_v19 }
 0x1ac   : > { %2908 = vmatpush1.bf16.msra.mxu0 %v4048_v21 }
 0x1ad   : > { %2748 = vmatpush1.bf16.msra.mxu1 %v4057_v10  ;;  %2909 = vmatprep.subr.bf16.mxu0 %v4056_v11 }
 0x1ae   : > { %3540 = vmatprep.subr.bf16.mxu1 %v3539_v26 }
 0x1b0   : > { %2750 = vmatmul.mubr.bf16.vlgmr.msra.gmra.mrb[0].mxu1 %v1288_v35  ;;  %2910 = vmatpush1.bf16.msra.mxu0 %v4054_v37  ;;  %v3494_v37 = vld [vmem:[%s388_s30] ss:$0 sm:$0xff] }
 0x1b1   : > { %3542 = vmatpush3.bf16.msra.mxu1 %v3541_v36  ;;  %2911 = vmatprep.subr.bf16.mxu0 %v4062_v24 }
 0x1b2   : > { %3544 = vmatprep.subr.bf16.mxu1 %v3543_v14 }
 0x1b4   : > { %2912 = vmatpush1.bf16.msra.mxu0 %v4060_v40 }
 0x1b5   : > { %3546 = vmatpush3.bf16.msra.mxu1 %v3545_v47 }
 0x1b6   : > { %3548 = vmatprep.subr.bf16.mxu1 %v3547_v42 }
 0x1b7   : > { %2914 = vmatmul.mubr.bf16.vlgmr.msra.gmra.mrb[0].mxu0 %v1296_v45 }
 0x1b9   : > { %3550 = vmatpush3.bf16.msra.mxu1 %v3549_v46 }
 0x1ba   : > { %3552 = vmatprep.subr.bf16.mxu1 %v3551_v59 }
 0x1bd   : > { %3554 = vmatpush3.bf16.msra.mxu1 %v3553_v1 }
 0x1be   : > { %3556 = vmatprep.subr.bf16.mxu1 %v3555_v53 }
 0x1c1   : > { %3558 = vmatpush3.bf16.msra.mxu1 %v3557_v51 }
 0x1c2   : > { %3560 = vmatprep.subr.bf16.mxu1 %v3559_v54 }
 0x1c5   : > { %3562 = vmatpush3.bf16.msra.mxu1 %v3561_v7 }
 0x1c6   : > { %3564 = vmatprep.subr.bf16.mxu1 %v3563_v60 }
 0x1c9   : > { %3566 = vmatpush3.bf16.msra.mxu1 %v3565_v0 }
 0x1ca   : > { %3568 = vmatprep.subr.bf16.mxu1 %v3567_v6 }
 0x1cd   : > { %3570 = vmatpush3.bf16.msra.mxu1 %v3569_v23 }
 0x283   : > { %v2751_v31 = vpop.f32.mrb[0].mxu1 }
 0x284   : > { %v2753_v25 = vpop.f32.mrb[1].mxu1  ;;  %v3571_v21 = vadd.f32 %v2751_v31, %v1194_v34 }
 0x285   : > { %v2755_v9 = vpop.f32.mrb[2].mxu1  ;;  %v3573_v26 = vadd.f32 %v2753_v25, %v1198_v20 }
 0x286   : > { %v2756_v10 = vpop.f32.mrb[3].mxu1 }
 0x28a   : > { %v2915_v12 = vpop.f32.mrb[0].mxu0 }
 0x28b   : > { %v3572_v27 = vadd.f32 %v3571_v21, %v2915_v12  ;;  %v2917_v11 = vpop.f32.mrb[1].mxu0 }
 0x28c   : > { %v3574_v32 = vadd.f32 %v3573_v26, %v2917_v11  ;;  %v2919_v33 = vpop.f32.mrb[2].mxu0 }
 0x28d   : > { %v2920_v35 = vpop.f32.mrb[3].mxu0 }
 0x28e   : > { %3025 = vmatprep.mubr.f32.mxu1 %v3574_v32 }
 0x28f   : > { %3026 = vmatmul.mubr.f32.vlgmr.msra.gmra.mrb[4].mxu1 %v3572_v27 }
 0x362   : > { %v3536_v36 = vpop.f32.mrb[4].mxu1 }
 0x363   : > { %v3537_v14 = vpop.f32.mrb[5].mxu1 }
 0x364   : > { %v3538_v17 = vadd.f32 %v3537_v14, %v3536_v36 }
 0x366   : > { %v3028_v56 = vadd.f32 %v3538_v17, %v3494_v37 }
 0x368   : > { %3031 = vst [vmem:[%s433_s11] sm:$0x3] %v3028_v56 }
 0x369   : > { %4188 = shalt.err (!%p4185_p10)
}
 0x36a   : > { %s4189_s1 = scalar_lea.hbm %s5164_s0, 32  ;;  %s4193_s27 = scalar_lea.hbm %s5217_s5, 128 }
 0x36b   : > { %p4190_p8 = scmp.ne.s32.totalorder %s5164_s0, %s4189_s1  ;;  %p4194_p2 = scmp.lt.u32.totalorder %s5164_s0, %s5217_s5 }
 0x36c   : > { %p4195_p3 = scmp.lt.u32.totalorder %s4193_s27, %s4189_s1  ;;  %p4197_p4 = scmp.lt.u32.totalorder %s4189_s1, %s5164_s0 }
 0x36d   : > { %p4191_p0 = pnand %p4190_p8, %p5236_p11 }
 0x36e   : > { %p4196_p9 = por %p4195_p3, %p4194_p2 }
 0x36f   : > { %p4192_p13 = pneg %p4191_p0 }
 0x370   : > { %p4198_p5 = por %p4197_p4, %p4196_p9 }
 0x372   : > { %p4199_p6 = pnand %p4198_p5, %p4192_p13 }
 0x374   : > { %4202 = shalt.err (!%p4199_p6)
}
 0x375   : > { %3616 = dma.vmem_to_hbm [thread:$0]  (%p5236_p11), %s5166_s9, 32, %s5164_s0, %s3033_s26  }
 0x376 PF: > { %p3622_p1 = scmp.ge.s32.totalorder %s4265_s23, 2  ;;  %s3059_s29 = sand.u32 1, %s4245_s18  }
 0x377   : > { %p5237_p7 = scmp.ne.s32.totalorder %s5231_s8, 0  ;;  %s3060_s7 = scalar_lea.sflag [#allocation4], %s3059_s29 }
 0x379   : > { %p3619_p12 = pnand %p3622_p1, %p5237_p7 }
 0x37b   : > { %4240 = dma.done.wait (!%p3619_p12), %s3060_s7, 32  }
 0x37c   : > { %4242 = vsyncadd (!%p3619_p12), %s3060_s7, 4294967264  ;;  %s27_s23 = sadd.s32 1, %s4265_s23   ;;  %s5238_s24 = sld [smem:[#allocation19_spill]] }
 0x37d   : > { %p24_p10 = scmp.ge.s32.totalorder %s27_s23, 6   ;;  %s5239_s20 = sld [smem:[#allocation21_spill]] }
 0x37e   : > { %s5240_s6 = sld [smem:[#allocation20_spill]]  ;;  %s5241_s18 = smov %s4249_s19 }
 0x37f   : > { %s5243_s21 = smov %s4261_s22  ;;  %26 = sbr.rel (!%p24_p10) target bundleno = 13 (0xd), region = 138 }
 0x382   : > { %s5242_s19 = smov %s5238_s24 }
 0x384   : > { %s5244_s22 = smov %s5240_s6 }
 0x386   :  { %3065 = vsyncpa [#allocation3], 1 }
 0x387   :  { %3067 = vsyncpa [#allocation3 + $0x1], 1 }
 0x388   :  { %3068 = vsyncpa [#allocation6], 1 }
 0x389   :  { %3070 = vsyncpa [#allocation6 + $0x1], 1 }
 0x38a   :  { %3071 = vsyncpa [#allocation9], 1 }
 0x38b   :  { %3073 = vsyncpa [#allocation9 + $0x1], 1 }
 0x38c   :  { %3074 = vsyncpa [#allocation4], 1 }
 0x38d   :  { %3076 = vsyncpa [#allocation4 + $0x1], 1 }

</bundles_post_ra>
